<compile_context>
chip_gen: v7x
topology: tpu7x:2x2x1
jax: 0.10.0
libtpu: 0.0.40
codegen_flags: <defaults>
</compile_context>

<pallas_src>
import math
import functools

import jax
import jax.numpy as jnp
from jax.experimental import pallas as pl
from jax.experimental.pallas import tpu as pltpu


# ----------------------------- Pallas kernel ----------------------------------

def _layernorm(x, g, b, eps=1e-5):
    mu = jnp.mean(x, axis=-1, keepdims=True)
    var = jnp.mean((x - mu) ** 2, axis=-1, keepdims=True)
    return (x - mu) * jax.lax.rsqrt(var + eps) * g + b


def fused_forward_kernel(ids_ref, mask_ref,
                         emb_ref,
                         wq_ref, bq_ref, wkv_ref, bkv_ref,
                         wo_ref, bo_ref,
                         ln1_g_ref, ln1_b_ref,
                         w1_ref, b1_ref, w2_ref, b2_ref,
                         ln2_g_ref, ln2_b_ref,
                         fc_w_ref, fc_b_ref, reg_w_ref, reg_b_ref,
                         out_ref):
    """One batch tile: embed -> encoder layer (CLS query only) -> head.

    ids_ref:  (Bt, S) int32 token ids
    mask_ref: (Bt, S) int32 attention mask (1 = real token, 0 = padding)
    out_ref:  (1, 1, Bt) popularity scores, batch on the lane axis
    """
    Bt, S = ids_ref.shape
    V, H = emb_ref.shape
    f32, bf16 = jnp.float32, jnp.bfloat16

    # --- fused embedding gather: one-hot(ids) @ emb on the MXU (bf16) --------
    # TODO(synk): only viable for the tiny synthetic vocab; the real 30K-token
    # MPNet vocab needs a DMA row-gather (pl.Element / make_async_copy) instead.
    iota_v = jax.lax.broadcasted_iota(jnp.int32, (Bt, S, V), 2)
    onehot = jnp.where(ids_ref[...][:, :, None] == iota_v, 1.0, 0.0)
    onehot = onehot.astype(bf16).reshape(Bt * S, V)
    x = jnp.dot(onehot, emb_ref[...], preferred_element_type=f32)    # (Bt*S,H) f32
    xb = x.astype(bf16)

    # --- K/V projection for every token (bf16 MXU, f32 accumulate) -----------
    kv = jnp.dot(xb, wkv_ref[...], preferred_element_type=f32) + bkv_ref[...]
    kv = kv.reshape(Bt, S, 2 * H)
    k = kv[:, :, :H].astype(bf16)                                     # (Bt,S,H)
    v = kv[:, :, H:].astype(bf16)                                     # (Bt,S,H)

    # --- CLS-only query: only seq position 0 ever reaches the head -----------
    x_cls = x.reshape(Bt, S, H)[:, 0, :]                              # (Bt,H) f32
    # 1/sqrt(H) is folded into wq at init (valid while bq == 0).
    q = jnp.dot(x_cls.astype(bf16), wq_ref[...],
                preferred_element_type=f32) + bq_ref[...]             # (Bt,H) f32

    # --- attention scores for the single CLS query: (Bt, 1, S) ---------------
    scores = jnp.einsum("bqd,bkd->bqk", q[:, None, :].astype(bf16), k,
                        preferred_element_type=f32)                   # (Bt,1,S)
    bias = (1.0 - mask_ref[...].astype(f32)) * -1e9                   # (Bt,S) keys
    scores = scores + bias[:, None, :]

    # softmax in f32; EUP approx reciprocal instead of a VALU divide
    m = jnp.max(scores, axis=-1, keepdims=True)
    p = jnp.exp(scores - m)
    p = p * pl.reciprocal(jnp.sum(p, axis=-1, keepdims=True), approx=True)

    attn = jnp.einsum("bqk,bkd->bqd", p.astype(bf16), v,
                      preferred_element_type=f32).reshape(Bt, H)      # (Bt,H)
    attn_out = jnp.dot(attn.astype(bf16), wo_ref[...],
                       preferred_element_type=f32) + bo_ref[...]

    h1 = _layernorm(x_cls + attn_out, ln1_g_ref[...], ln1_b_ref[...])  # (Bt,H)

    # --- feed forward, on the Bt CLS rows only --------------------------------
    # TODO(synk): real MPNet uses exact (erf) GELU; tanh approximation kept here.
    ff = jnp.dot(h1.astype(bf16), w1_ref[...],
                 preferred_element_type=f32) + b1_ref[...]
    ff = jax.nn.gelu(ff, approximate=True)
    ff = jnp.dot(ff.astype(bf16), w2_ref[...],
                 preferred_element_type=f32) + b2_ref[...]
    h2 = _layernorm(h1 + ff, ln2_g_ref[...], ln2_b_ref[...])           # (Bt,H)

    # --- head: fc -> tanh -> regressor, lane-dense (1, Bt) result ------------
    hh = jnp.tanh(jnp.dot(h2.astype(bf16), fc_w_ref[...],
                          preferred_element_type=f32) + fc_b_ref[...])
    score = jnp.einsum("oh,bh->ob", reg_w_ref[...], hh.astype(bf16),
                       preferred_element_type=f32) + reg_b_ref[...]    # (1,Bt)
    out_ref[0] = score.astype(out_ref.dtype)


# ------------------------------ wrapper ----------------------------------------

_WEIGHT_ORDER = ("emb", "wq", "bq", "wkv", "bkv", "wo", "bo",
                 "ln1_g", "ln1_b", "w1", "b1", "w2", "b2",
                 "ln2_g", "ln2_b", "fc_w", "fc_b", "reg_w", "reg_b")


def popularity_prediction_forward(input_ids, attention_mask, params,
                                  *, batch_tile=8):
    """Mirror of PopularityPredictionModel.forward.

    input_ids:      (B, S) int32
    attention_mask: (B, S) int (1 = real token, 0 = padding)
    returns:        (B, 1) float32 popularity scores
    """
    B, S = input_ids.shape
    V, H = params["emb"].shape
    F = params["w1"].shape[1]

    # Pad batch to a multiple of the tile so block shapes stay (8,128)-legal.
    # For real workloads pick Bt so Bt*S >= 256 (MXU M dim) — here S is tiny.
    Bt = batch_tile
    B_pad = ((B + Bt - 1) // Bt) * Bt
    if B_pad != B:
        pad = B_pad - B
        input_ids = jnp.pad(input_ids, ((0, pad), (0, 0)))
        attention_mask = jnp.pad(attention_mask, ((0, pad), (0, 0)))
    num_tiles = B_pad // Bt

    input_ids = input_ids.astype(jnp.int32)
    attention_mask = attention_mask.astype(jnp.int32)
    weights = [params[n] for n in _WEIGHT_ORDER]

    in_specs = (
        [pl.BlockSpec((Bt, S), lambda b: (b, 0)),      # input_ids tile
         pl.BlockSpec((Bt, S), lambda b: (b, 0))]      # attention_mask tile
        # weights: full blocks + constant index_map -> DMA'd once, stay resident
        + [pl.BlockSpec(w.shape, lambda b, nd=w.ndim: (0,) * nd) for w in weights]
    )
    out_specs = pl.BlockSpec((1, 1, Bt), lambda b: (b, 0, 0))

    flops = (2 * B_pad * S * V * H            # embedding one-hot matmul
             + 2 * B_pad * S * H * 2 * H      # K/V projection
             + 2 * B_pad * H * H              # CLS query projection
             + 2 * B_pad * S * H * 2          # scores + attn @ V (CLS query only)
             + 2 * B_pad * H * H              # wo
             + 2 * B_pad * (H * F + F * H)    # FFN
             + 2 * B_pad * H * H              # fc head
             + 2 * B_pad * H)                 # regressor
    transcendentals = B_pad * (S + F + 2 * H)
    bytes_accessed = (input_ids.size * 4 + attention_mask.size * 4 + B_pad * 4
                      + sum(int(w.size) * int(w.dtype.itemsize) for w in weights))

    out = pl.pallas_call(
        fused_forward_kernel,
        out_shape=jax.ShapeDtypeStruct((num_tiles, 1, Bt), jnp.float32),
        grid_spec=pltpu.PrefetchScalarGridSpec(
            num_scalar_prefetch=0,
            grid=(num_tiles,),
            in_specs=in_specs,
            out_specs=out_specs),
        compiler_params=pltpu.CompilerParams(
            # batch tiles are independent -> shard across TensorCores (2 on v7x)
            dimension_semantics=("parallel",),
            vmem_limit_bytes=32 * 1024 * 1024),
        cost_estimate=pl.CostEstimate(flops=int(flops),
                                      transcendentals=int(transcendentals),
                                      bytes_accessed=int(bytes_accessed)),
    )(input_ids, attention_mask, *weights)

    return out.reshape(B_pad, 1)[:B]


# ---------------------------- parameter init -----------------------------------

def init_params(key, vocab=128, hidden=128, ffn=256):
    ks = jax.random.split(key, 10)
    s = 0.02
    H, F, V = hidden, ffn, vocab
    bf16 = jnp.bfloat16
    # Fold the attention 1/sqrt(H) scale into wq (a constant at init, so no
    # per-call VPU multiply inside the kernel). Valid only while bq == 0.
    scale = 1.0 / math.sqrt(H)
    return {
        "emb":   (s * jax.random.normal(ks[0], (V, H), jnp.float32)).astype(bf16),
        "wq":    (s * scale * jax.random.normal(ks[1], (H, H), jnp.float32)).astype(bf16),
        "bq":    jnp.zeros((1, H), jnp.float32),
        "wkv":   (s * jax.random.normal(ks[2], (H, 2 * H), jnp.float32)).astype(bf16),
        "bkv":   jnp.zeros((1, 2 * H), jnp.float32),
        "wo":    (s * jax.random.normal(ks[3], (H, H), jnp.float32)).astype(bf16),
        "bo":    jnp.zeros((1, H), jnp.float32),
        "ln1_g": jnp.ones((1, H), jnp.float32),
        "ln1_b": jnp.zeros((1, H), jnp.float32),
        "w1":    (s * jax.random.normal(ks[4], (H, F), jnp.float32)).astype(bf16),
        "b1":    jnp.zeros((1, F), jnp.float32),
        "w2":    (s * jax.random.normal(ks[5], (F, H), jnp.float32)).astype(bf16),
        "b2":    jnp.zeros((1, H), jnp.float32),
        "ln2_g": jnp.ones((1, H), jnp.float32),
        "ln2_b": jnp.zeros((1, H), jnp.float32),
        # head (the module's own nn.Linear layers)
        "fc_w":  (s * jax.random.normal(ks[6], (H, H), jnp.float32)).astype(bf16),
        "fc_b":  jnp.zeros((1, H), jnp.float32),
        "reg_w": (s * jax.random.normal(ks[7], (1, H), jnp.float32)).astype(bf16),
        "reg_b": jnp.zeros((1, 1), jnp.float32),
    }


# ---------------------------------- main ----------------------------------------

if __name__ == "__main__":
    B, S, H, VOCAB = 2, 8, 128, 128

    key = jax.random.PRNGKey(0)
    pkey, ikey = jax.random.split(key)
    params = init_params(pkey, vocab=VOCAB, hidden=H)

    # deterministic "tokenized headline": a few real tokens then padding
    input_ids = jax.random.randint(ikey, (B, S), 0, VOCAB, dtype=jnp.int32)
    attention_mask = (jnp.arange(S)[None, :] < jnp.array([[5], [6]])).astype(jnp.int32)

    fwd = jax.jit(functools.partial(popularity_prediction_forward, params=params))
    scores = fwd(input_ids, attention_mask)
    jax.block_until_ready(scores)

    assert scores.shape == (B, 1) and scores.dtype == jnp.float32
    print("KERNEL_OK")
</pallas_src>

<mosaic_0001>
module attributes {stable_mosaic.version = 11 : i64} {
  func.func @fused_forward_kernel(%arg0: i32, %arg1: memref<8x8xi32, #tpu.memory_space<vmem>>, %arg2: memref<8x8xi32, #tpu.memory_space<vmem>>, %arg3: memref<128x128xbf16, #tpu.memory_space<vmem>>, %arg4: memref<128x128xbf16, #tpu.memory_space<vmem>>, %arg5: memref<1x128xf32, #tpu.memory_space<vmem>>, %arg6: memref<128x256xbf16, #tpu.memory_space<vmem>>, %arg7: memref<1x256xf32, #tpu.memory_space<vmem>>, %arg8: memref<128x128xbf16, #tpu.memory_space<vmem>>, %arg9: memref<1x128xf32, #tpu.memory_space<vmem>>, %arg10: memref<1x128xf32, #tpu.memory_space<vmem>>, %arg11: memref<1x128xf32, #tpu.memory_space<vmem>>, %arg12: memref<128x256xbf16, #tpu.memory_space<vmem>>, %arg13: memref<1x256xf32, #tpu.memory_space<vmem>>, %arg14: memref<256x128xbf16, #tpu.memory_space<vmem>>, %arg15: memref<1x128xf32, #tpu.memory_space<vmem>>, %arg16: memref<1x128xf32, #tpu.memory_space<vmem>>, %arg17: memref<1x128xf32, #tpu.memory_space<vmem>>, %arg18: memref<128x128xbf16, #tpu.memory_space<vmem>>, %arg19: memref<1x128xf32, #tpu.memory_space<vmem>>, %arg20: memref<1x128xbf16, #tpu.memory_space<vmem>>, %arg21: memref<1x1xf32, #tpu.memory_space<vmem>>, %arg22: memref<1x1x8xf32, #tpu.memory_space<vmem>>) attributes {dimension_semantics = [#tpu.dimension_semantics<parallel>], iteration_bounds = array<i64: 1>, scalar_prefetch = 0 : i64, scratch_operands = 0 : i64, tpu.core_type = #tpu.core_type<tc>, window_params = [{transform_indices = @transform_0, window_bounds = array<i64: 8, 8>}, {transform_indices = @transform_1, window_bounds = array<i64: 8, 8>}, {pipeline_mode = #tpu.pipeline_mode<synchronous>, transform_indices = @transform_2, window_bounds = array<i64: 128, 128>}, {pipeline_mode = #tpu.pipeline_mode<synchronous>, transform_indices = @transform_3, window_bounds = array<i64: 128, 128>}, {pipeline_mode = #tpu.pipeline_mode<synchronous>, transform_indices = @transform_4, window_bounds = array<i64: 1, 128>}, {pipeline_mode = #tpu.pipeline_mode<synchronous>, transform_indices = @transform_5, window_bounds = array<i64: 128, 256>}, {pipeline_mode = #tpu.pipeline_mode<synchronous>, transform_indices = @transform_6, window_bounds = array<i64: 1, 256>}, {pipeline_mode = #tpu.pipeline_mode<synchronous>, transform_indices = @transform_7, window_bounds = array<i64: 128, 128>}, {pipeline_mode = #tpu.pipeline_mode<synchronous>, transform_indices = @transform_8, window_bounds = array<i64: 1, 128>}, {pipeline_mode = #tpu.pipeline_mode<synchronous>, transform_indices = @transform_9, window_bounds = array<i64: 1, 128>}, {pipeline_mode = #tpu.pipeline_mode<synchronous>, transform_indices = @transform_10, window_bounds = array<i64: 1, 128>}, {pipeline_mode = #tpu.pipeline_mode<synchronous>, transform_indices = @transform_11, window_bounds = array<i64: 128, 256>}, {pipeline_mode = #tpu.pipeline_mode<synchronous>, transform_indices = @transform_12, window_bounds = array<i64: 1, 256>}, {pipeline_mode = #tpu.pipeline_mode<synchronous>, transform_indices = @transform_13, window_bounds = array<i64: 256, 128>}, {pipeline_mode = #tpu.pipeline_mode<synchronous>, transform_indices = @transform_14, window_bounds = array<i64: 1, 128>}, {pipeline_mode = #tpu.pipeline_mode<synchronous>, transform_indices = @transform_15, window_bounds = array<i64: 1, 128>}, {pipeline_mode = #tpu.pipeline_mode<synchronous>, transform_indices = @transform_16, window_bounds = array<i64: 1, 128>}, {pipeline_mode = #tpu.pipeline_mode<synchronous>, transform_indices = @transform_17, window_bounds = array<i64: 128, 128>}, {pipeline_mode = #tpu.pipeline_mode<synchronous>, transform_indices = @transform_18, window_bounds = array<i64: 1, 128>}, {pipeline_mode = #tpu.pipeline_mode<synchronous>, transform_indices = @transform_19, window_bounds = array<i64: 1, 128>}, {pipeline_mode = #tpu.pipeline_mode<synchronous>, transform_indices = @transform_20, window_bounds = array<i64: 1, 1>}, {transform_indices = @transform_21, window_bounds = array<i64: 1, 1, 8>}]} {
    %0 = tpu.iota {dimensions = array<i32: 2>} : vector<8x8x128xi32>
    %c0 = arith.constant 0 : index
    %c0_0 = arith.constant 0 : index
    %1 = vector.load %arg1[%c0, %c0_0] : memref<8x8xi32, #tpu.memory_space<vmem>>, vector<8x8xi32>
    %2 = vector.shape_cast %1 : vector<8x8xi32> to vector<8x8x1xi32>
    %3 = vector.broadcast %2 : vector<8x8x1xi32> to vector<8x8x128xi32>
    %4 = arith.cmpi eq, %3, %0 : vector<8x8x128xi32>
    %cst = arith.constant 1.000000e+00 : f32
    %cst_1 = arith.constant 0.000000e+00 : f32
    %5 = vector.broadcast %cst : f32 to vector<8x8x128xf32>
    %6 = vector.broadcast %cst_1 : f32 to vector<8x8x128xf32>
    %7 = arith.select %4, %5, %6 : vector<8x8x128xi1>, vector<8x8x128xf32>
    %8 = arith.truncf %7 : vector<8x8x128xf32> to vector<8x8x128xbf16>
    %9 = vector.shape_cast %8 : vector<8x8x128xbf16> to vector<64x128xbf16>
    %c0_2 = arith.constant 0 : index
    %c0_3 = arith.constant 0 : index
    %10 = vector.load %arg3[%c0_2, %c0_3] : memref<128x128xbf16, #tpu.memory_space<vmem>>, vector<128x128xbf16>
    %cst_4 = arith.constant dense<0.000000e+00> : vector<64x128xf32>
    %11 = tpu.matmul %9, %10, %cst_4 {dimension_numbers = #tpu.dot_dimension_numbers<[1], [0], [0], [1], [0, 0, 1, 1], [], []>} : vector<64x128xbf16>, vector<128x128xbf16>, vector<64x128xf32> -> vector<64x128xf32>
    %12 = arith.truncf %11 : vector<64x128xf32> to vector<64x128xbf16>
    %c0_5 = arith.constant 0 : index
    %c0_6 = arith.constant 0 : index
    %13 = vector.load %arg6[%c0_5, %c0_6] : memref<128x256xbf16, #tpu.memory_space<vmem>>, vector<128x256xbf16>
    %cst_7 = arith.constant dense<0.000000e+00> : vector<64x256xf32>
    %14 = tpu.matmul %12, %13, %cst_7 {dimension_numbers = #tpu.dot_dimension_numbers<[1], [0], [0], [1], [0, 0, 1, 1], [], []>} : vector<64x128xbf16>, vector<128x256xbf16>, vector<64x256xf32> -> vector<64x256xf32>
    %c0_8 = arith.constant 0 : index
    %c0_9 = arith.constant 0 : index
    %15 = vector.load %arg7[%c0_8, %c0_9] : memref<1x256xf32, #tpu.memory_space<vmem>>, vector<1x256xf32>
    %16 = vector.broadcast %15 : vector<1x256xf32> to vector<64x256xf32>
    %17 = arith.addf %14, %16 : vector<64x256xf32>
    %18 = vector.shape_cast %17 : vector<64x256xf32> to vector<8x8x256xf32>
    %19 = vector.extract_strided_slice %18 {offsets = [0, 0, 0], sizes = [8, 8, 128], strides = [1, 1, 1]} : vector<8x8x256xf32> to vector<8x8x128xf32>
    %20 = arith.truncf %19 : vector<8x8x128xf32> to vector<8x8x128xbf16>
    %21 = vector.extract_strided_slice %18 {offsets = [0, 0, 128], sizes = [8, 8, 128], strides = [1, 1, 1]} : vector<8x8x256xf32> to vector<8x8x128xf32>
    %22 = arith.truncf %21 : vector<8x8x128xf32> to vector<8x8x128xbf16>
    %23 = vector.shape_cast %11 : vector<64x128xf32> to vector<8x8x128xf32>
    %24 = vector.extract_strided_slice %23 {offsets = [0, 0, 0], sizes = [8, 1, 128], strides = [1, 1, 1]} : vector<8x8x128xf32> to vector<8x1x128xf32>
    %25 = vector.shape_cast %24 : vector<8x1x128xf32> to vector<8x128xf32>
    %26 = arith.truncf %25 : vector<8x128xf32> to vector<8x128xbf16>
    %c0_10 = arith.constant 0 : index
    %c0_11 = arith.constant 0 : index
    %27 = vector.load %arg4[%c0_10, %c0_11] : memref<128x128xbf16, #tpu.memory_space<vmem>>, vector<128x128xbf16>
    %cst_12 = arith.constant dense<0.000000e+00> : vector<8x128xf32>
    %28 = tpu.matmul %26, %27, %cst_12 {dimension_numbers = #tpu.dot_dimension_numbers<[1], [0], [0], [1], [0, 0, 1, 1], [], []>} : vector<8x128xbf16>, vector<128x128xbf16>, vector<8x128xf32> -> vector<8x128xf32>
    %c0_13 = arith.constant 0 : index
    %c0_14 = arith.constant 0 : index
    %29 = vector.load %arg5[%c0_13, %c0_14] : memref<1x128xf32, #tpu.memory_space<vmem>>, vector<1x128xf32>
    %30 = vector.broadcast %29 : vector<1x128xf32> to vector<8x128xf32>
    %31 = arith.addf %28, %30 : vector<8x128xf32>
    %32 = vector.shape_cast %31 : vector<8x128xf32> to vector<8x1x128xf32>
    %33 = arith.truncf %32 : vector<8x1x128xf32> to vector<8x1x128xbf16>
    "tpu.trace_start"() <{level = 10 : i32, message = "bqd,bkd->bqk"}> : () -> ()
    %cst_15 = arith.constant dense<0.000000e+00> : vector<8x1x8xf32>
    %34 = tpu.matmul %33, %20, %cst_15 {dimension_numbers = #tpu.dot_dimension_numbers<[2], [2], [1], [1], [0, 0, 0, 1, 1, 1], [0], [0]>} : vector<8x1x128xbf16>, vector<8x8x128xbf16>, vector<8x1x8xf32> -> vector<8x1x8xf32>
    "tpu.trace_stop"() : () -> ()
    %c0_16 = arith.constant 0 : index
    %c0_17 = arith.constant 0 : index
    %35 = vector.load %arg2[%c0_16, %c0_17] : memref<8x8xi32, #tpu.memory_space<vmem>>, vector<8x8xi32>
    %36 = arith.sitofp %35 : vector<8x8xi32> to vector<8x8xf32>
    %cst_18 = arith.constant 1.000000e+00 : f32
    %37 = vector.broadcast %cst_18 : f32 to vector<8x8xf32>
    %38 = arith.subf %37, %36 : vector<8x8xf32>
    %cst_19 = arith.constant -1.000000e+09 : f32
    %39 = vector.broadcast %cst_19 : f32 to vector<8x8xf32>
    %40 = arith.mulf %38, %39 : vector<8x8xf32>
    %41 = vector.shape_cast %40 : vector<8x8xf32> to vector<8x1x8xf32>
    %42 = arith.addf %34, %41 : vector<8x1x8xf32>
    %cst_20 = arith.constant dense<0xFF800000> : vector<8x1xf32>
    %43 = vector.multi_reduction <maximumf>, %42, %cst_20 [2] : vector<8x1x8xf32> to vector<8x1xf32>
    %44 = vector.shape_cast %43 : vector<8x1xf32> to vector<8x1x1xf32>
    %45 = vector.broadcast %44 : vector<8x1x1xf32> to vector<8x1x8xf32>
    %46 = arith.subf %42, %45 : vector<8x1x8xf32>
    %47 = math.exp %46 : vector<8x1x8xf32>
    %cst_21 = arith.constant dense<0.000000e+00> : vector<8x1xf32>
    %48 = vector.multi_reduction <add>, %47, %cst_21 [2] : vector<8x1x8xf32> to vector<8x1xf32>
    %49 = vector.shape_cast %48 : vector<8x1xf32> to vector<8x1x1xf32>
    %50 = tpu.reciprocal %49 {approx = true} : vector<8x1x1xf32> -> vector<8x1x1xf32>
    %51 = vector.broadcast %50 : vector<8x1x1xf32> to vector<8x1x8xf32>
    %52 = arith.mulf %47, %51 : vector<8x1x8xf32>
    %53 = arith.truncf %52 : vector<8x1x8xf32> to vector<8x1x8xbf16>
    "tpu.trace_start"() <{level = 10 : i32, message = "bqk,bkd->bqd"}> : () -> ()
    %cst_22 = arith.constant dense<0.000000e+00> : vector<8x1x128xf32>
    %54 = tpu.matmul %53, %22, %cst_22 {dimension_numbers = #tpu.dot_dimension_numbers<[2], [1], [1], [2], [0, 0, 0, 1, 1, 2], [0], [0]>} : vector<8x1x8xbf16>, vector<8x8x128xbf16>, vector<8x1x128xf32> -> vector<8x1x128xf32>
    "tpu.trace_stop"() : () -> ()
    %55 = vector.shape_cast %54 : vector<8x1x128xf32> to vector<8x128xf32>
    %56 = arith.truncf %55 : vector<8x128xf32> to vector<8x128xbf16>
    %c0_23 = arith.constant 0 : index
    %c0_24 = arith.constant 0 : index
    %57 = vector.load %arg8[%c0_23, %c0_24] : memref<128x128xbf16, #tpu.memory_space<vmem>>, vector<128x128xbf16>
    %cst_25 = arith.constant dense<0.000000e+00> : vector<8x128xf32>
    %58 = tpu.matmul %56, %57, %cst_25 {dimension_numbers = #tpu.dot_dimension_numbers<[1], [0], [0], [1], [0, 0, 1, 1], [], []>} : vector<8x128xbf16>, vector<128x128xbf16>, vector<8x128xf32> -> vector<8x128xf32>
    %c0_26 = arith.constant 0 : index
    %c0_27 = arith.constant 0 : index
    %59 = vector.load %arg9[%c0_26, %c0_27] : memref<1x128xf32, #tpu.memory_space<vmem>>, vector<1x128xf32>
    %60 = vector.broadcast %59 : vector<1x128xf32> to vector<8x128xf32>
    %61 = arith.addf %58, %60 : vector<8x128xf32>
    %62 = arith.addf %25, %61 : vector<8x128xf32>
    %c0_28 = arith.constant 0 : index
    %c0_29 = arith.constant 0 : index
    %63 = vector.load %arg10[%c0_28, %c0_29] : memref<1x128xf32, #tpu.memory_space<vmem>>, vector<1x128xf32>
    %c0_30 = arith.constant 0 : index
    %c0_31 = arith.constant 0 : index
    %64 = vector.load %arg11[%c0_30, %c0_31] : memref<1x128xf32, #tpu.memory_space<vmem>>, vector<1x128xf32>
    %cst_32 = arith.constant dense<0.000000e+00> : vector<8xf32>
    %65 = vector.multi_reduction <add>, %62, %cst_32 [1] : vector<8x128xf32> to vector<8xf32>
    %66 = vector.shape_cast %65 : vector<8xf32> to vector<8x1xf32>
    %cst_33 = arith.constant 1.280000e+02 : f32
    %67 = vector.broadcast %cst_33 : f32 to vector<8x1xf32>
    %68 = arith.divf %66, %67 : vector<8x1xf32>
    %69 = vector.broadcast %68 : vector<8x1xf32> to vector<8x128xf32>
    %70 = arith.subf %62, %69 : vector<8x128xf32>
    %71 = arith.mulf %70, %70 : vector<8x128xf32>
    %cst_34 = arith.constant dense<0.000000e+00> : vector<8xf32>
    %72 = vector.multi_reduction <add>, %71, %cst_34 [1] : vector<8x128xf32> to vector<8xf32>
    %73 = vector.shape_cast %72 : vector<8xf32> to vector<8x1xf32>
    %cst_35 = arith.constant 1.280000e+02 : f32
    %74 = vector.broadcast %cst_35 : f32 to vector<8x1xf32>
    %75 = arith.divf %73, %74 : vector<8x1xf32>
    %76 = vector.broadcast %68 : vector<8x1xf32> to vector<8x128xf32>
    %77 = arith.subf %62, %76 : vector<8x128xf32>
    %cst_36 = arith.constant 9.99999974E-6 : f32
    %78 = vector.broadcast %cst_36 : f32 to vector<8x1xf32>
    %79 = arith.addf %75, %78 : vector<8x1xf32>
    %80 = math.rsqrt %79 : vector<8x1xf32>
    %81 = vector.broadcast %80 : vector<8x1xf32> to vector<8x128xf32>
    %82 = arith.mulf %77, %81 : vector<8x128xf32>
    %83 = vector.broadcast %63 : vector<1x128xf32> to vector<8x128xf32>
    %84 = arith.mulf %82, %83 : vector<8x128xf32>
    %85 = vector.broadcast %64 : vector<1x128xf32> to vector<8x128xf32>
    %86 = arith.addf %84, %85 : vector<8x128xf32>
    %87 = arith.truncf %86 : vector<8x128xf32> to vector<8x128xbf16>
    %c0_37 = arith.constant 0 : index
    %c0_38 = arith.constant 0 : index
    %88 = vector.load %arg12[%c0_37, %c0_38] : memref<128x256xbf16, #tpu.memory_space<vmem>>, vector<128x256xbf16>
    %cst_39 = arith.constant dense<0.000000e+00> : vector<8x256xf32>
    %89 = tpu.matmul %87, %88, %cst_39 {dimension_numbers = #tpu.dot_dimension_numbers<[1], [0], [0], [1], [0, 0, 1, 1], [], []>} : vector<8x128xbf16>, vector<128x256xbf16>, vector<8x256xf32> -> vector<8x256xf32>
    %c0_40 = arith.constant 0 : index
    %c0_41 = arith.constant 0 : index
    %90 = vector.load %arg13[%c0_40, %c0_41] : memref<1x256xf32, #tpu.memory_space<vmem>>, vector<1x256xf32>
    %91 = vector.broadcast %90 : vector<1x256xf32> to vector<8x256xf32>
    %92 = arith.addf %89, %91 : vector<8x256xf32>
    %93 = arith.mulf %92, %92 : vector<8x256xf32>
    %94 = arith.mulf %92, %93 : vector<8x256xf32>
    %cst_42 = arith.constant 4.471500e-02 : f32
    %95 = vector.broadcast %cst_42 : f32 to vector<8x256xf32>
    %96 = arith.mulf %95, %94 : vector<8x256xf32>
    %97 = arith.addf %92, %96 : vector<8x256xf32>
    %cst_43 = arith.constant 0.797884583 : f32
    %98 = vector.broadcast %cst_43 : f32 to vector<8x256xf32>
    %99 = arith.mulf %98, %97 : vector<8x256xf32>
    %100 = math.tanh %99 : vector<8x256xf32>
    %cst_44 = arith.constant 1.000000e+00 : f32
    %101 = vector.broadcast %cst_44 : f32 to vector<8x256xf32>
    %102 = arith.addf %101, %100 : vector<8x256xf32>
    %cst_45 = arith.constant 5.000000e-01 : f32
    %103 = vector.broadcast %cst_45 : f32 to vector<8x256xf32>
    %104 = arith.mulf %103, %102 : vector<8x256xf32>
    %105 = arith.mulf %92, %104 : vector<8x256xf32>
    %106 = arith.truncf %105 : vector<8x256xf32> to vector<8x256xbf16>
    %c0_46 = arith.constant 0 : index
    %c0_47 = arith.constant 0 : index
    %107 = vector.load %arg14[%c0_46, %c0_47] : memref<256x128xbf16, #tpu.memory_space<vmem>>, vector<256x128xbf16>
    %cst_48 = arith.constant dense<0.000000e+00> : vector<8x128xf32>
    %108 = tpu.matmul %106, %107, %cst_48 {dimension_numbers = #tpu.dot_dimension_numbers<[1], [0], [0], [1], [0, 0, 1, 1], [], []>} : vector<8x256xbf16>, vector<256x128xbf16>, vector<8x128xf32> -> vector<8x128xf32>
    %c0_49 = arith.constant 0 : index
    %c0_50 = arith.constant 0 : index
    %109 = vector.load %arg15[%c0_49, %c0_50] : memref<1x128xf32, #tpu.memory_space<vmem>>, vector<1x128xf32>
    %110 = vector.broadcast %109 : vector<1x128xf32> to vector<8x128xf32>
    %111 = arith.addf %108, %110 : vector<8x128xf32>
    %112 = arith.addf %86, %111 : vector<8x128xf32>
    %c0_51 = arith.constant 0 : index
    %c0_52 = arith.constant 0 : index
    %113 = vector.load %arg16[%c0_51, %c0_52] : memref<1x128xf32, #tpu.memory_space<vmem>>, vector<1x128xf32>
    %c0_53 = arith.constant 0 : index
    %c0_54 = arith.constant 0 : index
    %114 = vector.load %arg17[%c0_53, %c0_54] : memref<1x128xf32, #tpu.memory_space<vmem>>, vector<1x128xf32>
    %cst_55 = arith.constant dense<0.000000e+00> : vector<8xf32>
    %115 = vector.multi_reduction <add>, %112, %cst_55 [1] : vector<8x128xf32> to vector<8xf32>
    %116 = vector.shape_cast %115 : vector<8xf32> to vector<8x1xf32>
    %cst_56 = arith.constant 1.280000e+02 : f32
    %117 = vector.broadcast %cst_56 : f32 to vector<8x1xf32>
    %118 = arith.divf %116, %117 : vector<8x1xf32>
    %119 = vector.broadcast %118 : vector<8x1xf32> to vector<8x128xf32>
    %120 = arith.subf %112, %119 : vector<8x128xf32>
    %121 = arith.mulf %120, %120 : vector<8x128xf32>
    %cst_57 = arith.constant dense<0.000000e+00> : vector<8xf32>
    %122 = vector.multi_reduction <add>, %121, %cst_57 [1] : vector<8x128xf32> to vector<8xf32>
    %123 = vector.shape_cast %122 : vector<8xf32> to vector<8x1xf32>
    %cst_58 = arith.constant 1.280000e+02 : f32
    %124 = vector.broadcast %cst_58 : f32 to vector<8x1xf32>
    %125 = arith.divf %123, %124 : vector<8x1xf32>
    %126 = vector.broadcast %118 : vector<8x1xf32> to vector<8x128xf32>
    %127 = arith.subf %112, %126 : vector<8x128xf32>
    %cst_59 = arith.constant 9.99999974E-6 : f32
    %128 = vector.broadcast %cst_59 : f32 to vector<8x1xf32>
    %129 = arith.addf %125, %128 : vector<8x1xf32>
    %130 = math.rsqrt %129 : vector<8x1xf32>
    %131 = vector.broadcast %130 : vector<8x1xf32> to vector<8x128xf32>
    %132 = arith.mulf %127, %131 : vector<8x128xf32>
    %133 = vector.broadcast %113 : vector<1x128xf32> to vector<8x128xf32>
    %134 = arith.mulf %132, %133 : vector<8x128xf32>
    %135 = vector.broadcast %114 : vector<1x128xf32> to vector<8x128xf32>
    %136 = arith.addf %134, %135 : vector<8x128xf32>
    %137 = arith.truncf %136 : vector<8x128xf32> to vector<8x128xbf16>
    %c0_60 = arith.constant 0 : index
    %c0_61 = arith.constant 0 : index
    %138 = vector.load %arg18[%c0_60, %c0_61] : memref<128x128xbf16, #tpu.memory_space<vmem>>, vector<128x128xbf16>
    %cst_62 = arith.constant dense<0.000000e+00> : vector<8x128xf32>
    %139 = tpu.matmul %137, %138, %cst_62 {dimension_numbers = #tpu.dot_dimension_numbers<[1], [0], [0], [1], [0, 0, 1, 1], [], []>} : vector<8x128xbf16>, vector<128x128xbf16>, vector<8x128xf32> -> vector<8x128xf32>
    %c0_63 = arith.constant 0 : index
    %c0_64 = arith.constant 0 : index
    %140 = vector.load %arg19[%c0_63, %c0_64] : memref<1x128xf32, #tpu.memory_space<vmem>>, vector<1x128xf32>
    %141 = vector.broadcast %140 : vector<1x128xf32> to vector<8x128xf32>
    %142 = arith.addf %139, %141 : vector<8x128xf32>
    %143 = math.tanh %142 : vector<8x128xf32>
    %c0_65 = arith.constant 0 : index
    %c0_66 = arith.constant 0 : index
    %144 = vector.load %arg20[%c0_65, %c0_66] : memref<1x128xbf16, #tpu.memory_space<vmem>>, vector<1x128xbf16>
    %145 = arith.truncf %143 : vector<8x128xf32> to vector<8x128xbf16>
    "tpu.trace_start"() <{level = 10 : i32, message = "oh,bh->ob"}> : () -> ()
    %cst_67 = arith.constant dense<0.000000e+00> : vector<1x8xf32>
    %146 = tpu.matmul %144, %145, %cst_67 {dimension_numbers = #tpu.dot_dimension_numbers<[1], [1], [0], [0], [0, 0, 1, 0], [], []>} : vector<1x128xbf16>, vector<8x128xbf16>, vector<1x8xf32> -> vector<1x8xf32>
    "tpu.trace_stop"() : () -> ()
    %c0_68 = arith.constant 0 : index
    %c0_69 = arith.constant 0 : index
    %147 = vector.load %arg21[%c0_68, %c0_69] : memref<1x1xf32, #tpu.memory_space<vmem>>, vector<1x1xf32>
    %148 = vector.broadcast %147 : vector<1x1xf32> to vector<1x8xf32>
    %149 = arith.addf %146, %148 : vector<1x8xf32>
    %c0_70 = arith.constant 0 : index
    %c0_71 = arith.constant 0 : index
    %c0_72 = arith.constant 0 : index
    %150 = vector.load %arg22[%c0_70, %c0_71, %c0_72] : memref<1x1x8xf32, #tpu.memory_space<vmem>>, vector<1x1x8xf32>
    %151 = vector.shape_cast %150 : vector<1x1x8xf32> to vector<1x8xf32>
    %152 = vector.shape_cast %149 : vector<1x8xf32> to vector<1x1x8xf32>
    tpu.vector_store %arg22[%c0_70, %c0_71, %c0_72], %152 {strides = array<i32>} : memref<1x1x8xf32, #tpu.memory_space<vmem>>, vector<1x1x8xf32>,
    return
  }
  func.func @transform_0(%arg0: i32) -> (i32, i32) {
    %c0_i32 = arith.constant 0 : i32
    %c0_i32_0 = arith.constant 0 : i32
    return %arg0, %c0_i32 : i32, i32
  }
  func.func @transform_1(%arg0: i32) -> (i32, i32) {
    %c0_i32 = arith.constant 0 : i32
    %c0_i32_0 = arith.constant 0 : i32
    return %arg0, %c0_i32 : i32, i32
  }
  func.func @transform_2(%arg0: i32) -> (i32, i32) {
    %c0_i32 = arith.constant 0 : i32
    %c0_i32_0 = arith.constant 0 : i32
    %c0_i32_1 = arith.constant 0 : i32
    return %c0_i32, %c0_i32_0 : i32, i32
  }
  func.func @transform_3(%arg0: i32) -> (i32, i32) {
    %c0_i32 = arith.constant 0 : i32
    %c0_i32_0 = arith.constant 0 : i32
    %c0_i32_1 = arith.constant 0 : i32
    return %c0_i32, %c0_i32_0 : i32, i32
  }
  func.func @transform_4(%arg0: i32) -> (i32, i32) {
    %c0_i32 = arith.constant 0 : i32
    %c0_i32_0 = arith.constant 0 : i32
    %c0_i32_1 = arith.constant 0 : i32
    return %c0_i32, %c0_i32_0 : i32, i32
  }
  func.func @transform_5(%arg0: i32) -> (i32, i32) {
    %c0_i32 = arith.constant 0 : i32
    %c0_i32_0 = arith.constant 0 : i32
    %c0_i32_1 = arith.constant 0 : i32
    return %c0_i32, %c0_i32_0 : i32, i32
  }
  func.func @transform_6(%arg0: i32) -> (i32, i32) {
    %c0_i32 = arith.constant 0 : i32
    %c0_i32_0 = arith.constant 0 : i32
    %c0_i32_1 = arith.constant 0 : i32
    return %c0_i32, %c0_i32_0 : i32, i32
  }
  func.func @transform_7(%arg0: i32) -> (i32, i32) {
    %c0_i32 = arith.constant 0 : i32
    %c0_i32_0 = arith.constant 0 : i32
    %c0_i32_1 = arith.constant 0 : i32
    return %c0_i32, %c0_i32_0 : i32, i32
  }
  func.func @transform_8(%arg0: i32) -> (i32, i32) {
    %c0_i32 = arith.constant 0 : i32
    %c0_i32_0 = arith.constant 0 : i32
    %c0_i32_1 = arith.constant 0 : i32
    return %c0_i32, %c0_i32_0 : i32, i32
  }
  func.func @transform_9(%arg0: i32) -> (i32, i32) {
    %c0_i32 = arith.constant 0 : i32
    %c0_i32_0 = arith.constant 0 : i32
    %c0_i32_1 = arith.constant 0 : i32
    return %c0_i32, %c0_i32_0 : i32, i32
  }
  func.func @transform_10(%arg0: i32) -> (i32, i32) {
    %c0_i32 = arith.constant 0 : i32
    %c0_i32_0 = arith.constant 0 : i32
    %c0_i32_1 = arith.constant 0 : i32
    return %c0_i32, %c0_i32_0 : i32, i32
  }
  func.func @transform_11(%arg0: i32) -> (i32, i32) {
    %c0_i32 = arith.constant 0 : i32
    %c0_i32_0 = arith.constant 0 : i32
    %c0_i32_1 = arith.constant 0 : i32
    return %c0_i32, %c0_i32_0 : i32, i32
  }
  func.func @transform_12(%arg0: i32) -> (i32, i32) {
    %c0_i32 = arith.constant 0 : i32
    %c0_i32_0 = arith.constant 0 : i32
    %c0_i32_1 = arith.constant 0 : i32
    return %c0_i32, %c0_i32_0 : i32, i32
  }
  func.func @transform_13(%arg0: i32) -> (i32, i32) {
    %c0_i32 = arith.constant 0 : i32
    %c0_i32_0 = arith.constant 0 : i32
    %c0_i32_1 = arith.constant 0 : i32
    return %c0_i32, %c0_i32_0 : i32, i32
  }
  func.func @transform_14(%arg0: i32) -> (i32, i32) {
    %c0_i32 = arith.constant 0 : i32
    %c0_i32_0 = arith.constant 0 : i32
    %c0_i32_1 = arith.constant 0 : i32
    return %c0_i32, %c0_i32_0 : i32, i32
  }
  func.func @transform_15(%arg0: i32) -> (i32, i32) {
    %c0_i32 = arith.constant 0 : i32
    %c0_i32_0 = arith.constant 0 : i32
    %c0_i32_1 = arith.constant 0 : i32
    return %c0_i32, %c0_i32_0 : i32, i32
  }
  func.func @transform_16(%arg0: i32) -> (i32, i32) {
    %c0_i32 = arith.constant 0 : i32
    %c0_i32_0 = arith.constant 0 : i32
    %c0_i32_1 = arith.constant 0 : i32
    return %c0_i32, %c0_i32_0 : i32, i32
  }
  func.func @transform_17(%arg0: i32) -> (i32, i32) {
    %c0_i32 = arith.constant 0 : i32
    %c0_i32_0 = arith.constant 0 : i32
    %c0_i32_1 = arith.constant 0 : i32
    return %c0_i32, %c0_i32_0 : i32, i32
  }
  func.func @transform_18(%arg0: i32) -> (i32, i32) {
    %c0_i32 = arith.constant 0 : i32
    %c0_i32_0 = arith.constant 0 : i32
    %c0_i32_1 = arith.constant 0 : i32
    return %c0_i32, %c0_i32_0 : i32, i32
  }
  func.func @transform_19(%arg0: i32) -> (i32, i32) {
    %c0_i32 = arith.constant 0 : i32
    %c0_i32_0 = arith.constant 0 : i32
    %c0_i32_1 = arith.constant 0 : i32
    return %c0_i32, %c0_i32_0 : i32, i32
  }
  func.func @transform_20(%arg0: i32) -> (i32, i32) {
    %c0_i32 = arith.constant 0 : i32
    %c0_i32_0 = arith.constant 0 : i32
    %c0_i32_1 = arith.constant 0 : i32
    return %c0_i32, %c0_i32_0 : i32, i32
  }
  func.func @transform_21(%arg0: i32) -> (i32, i32, i32) {
    %c0_i32 = arith.constant 0 : i32
    %c0_i32_0 = arith.constant 0 : i32
    %c0_i32_1 = arith.constant 0 : i32
    return %arg0, %c0_i32, %c0_i32_0 : i32, i32, i32
  }
}

</mosaic_0001>

<bundles_post_ra>
// kernel: popularity_prediction_forward.1
= control target key start
LH: loop header
LB: loop body
LE: loop exit
PB: predicated region body
PF: predicated region fallthrough
CT: control target
= control target key end

     0   :  { %v71_v0 = vlaneseq  ;;  %v3192_v40 = vmov 0.0   ;;  %v3193_v48 = vmov 1.0|1.0   ;;  %v3194_v58 = vmov 0   ;;  %s4035_s0 = inlined_call_operand.vmem [shape: s32[8,8], index: 0, kind: input, shape index: {}]   ;;  %s4036_s2 = inlined_call_operand.vmem [shape: bf16[128,128], index: 2, kind: input, shape index: {}]   ;;  %s4037_s5 = inlined_call_operand.vmem [shape: bf16[128,256], index: 5, kind: input, shape index: {}]   ;;  %s4038_s3 = inlined_call_operand.vmem [shape: bf16[128,128], index: 3, kind: input, shape index: {}]   ;;  %s4039_s6 = inlined_call_operand.vmem [shape: f32[1,256], index: 6, kind: input, shape index: {}, may-alias: {6,12}]   ;;  %s4040_s4 = inlined_call_operand.vmem [shape: f32[1,128], index: 4, kind: input, shape index: {}, may-alias: {4,8,10,14,16,18}]   ;;  %s4041_s1 = inlined_call_operand.vmem [shape: s32[8,8], index: 1, kind: input, shape index: {}]   ;;  %s4042_s7 = inlined_call_operand.vmem [shape: bf16[128,128], index: 7, kind: input, shape index: {}]   ;;  %s4043_s8 = inlined_call_operand.vmem [shape: f32[1,128], index: 8, kind: input, shape index: {}, may-alias: {4,8,10,14,16,18}]   ;;  %s4044_s11 = inlined_call_operand.vmem [shape: bf16[128,256], index: 11, kind: input, shape index: {}]   ;;  %s4045_s9 = inlined_call_operand.vmem [shape: f32[1,128], index: 9, kind: input, shape index: {}, may-alias: {9,15}]   ;;  %s4046_s10 = inlined_call_operand.vmem [shape: f32[1,128], index: 10, kind: input, shape index: {}, may-alias: {4,8,10,14,16,18}]   ;;  %s4047_s13 = inlined_call_operand.vmem [shape: bf16[256,128], index: 13, kind: input, shape index: {}]   ;;  %s4048_s12 = inlined_call_operand.vmem [shape: f32[1,256], index: 12, kind: input, shape index: {}, may-alias: {6,12}]   ;;  %s4049_s14 = inlined_call_operand.vmem [shape: f32[1,128], index: 14, kind: input, shape index: {}, may-alias: {4,8,10,14,16,18}]   ;;  %s4050_s17 = inlined_call_operand.vmem [shape: bf16[128,128], index: 17, kind: input, shape index: {}]   ;;  %s4051_s15 = inlined_call_operand.vmem [shape: f32[1,128], index: 15, kind: input, shape index: {}, may-alias: {9,15}]   ;;  %s4052_s16 = inlined_call_operand.vmem [shape: f32[1,128], index: 16, kind: input, shape index: {}, may-alias: {4,8,10,14,16,18}]   ;;  %s4053_s20 = inlined_call_operand.<no memory space> [shape: f32[1,1], index: 20, kind: input, shape index: {}]   ;;  %s4054_s18 = inlined_call_operand.vmem [shape: f32[1,128], index: 18, kind: input, shape index: {}, may-alias: {4,8,10,14,16,18}]   ;;  %s4055_s19 = inlined_call_operand.vmem [shape: bf16[1,128], index: 19, kind: input, shape index: {}]   ;;  %s4056_s21 = inlined_call_operand.vmem [shape: f32[1,1,8], index: 21, kind: output, shape index: {}]  }
   0x1   :  { %4060 = sst [smem:[#allocation3_spill]] %s4035_s0  ;;  %451 = vmatprep.mubr.bf16.mxu1 %v3194_v58  ;;  %3052 = vset.pattern.permute.xlu1 %v3194_v58  ;;  %vm3195_vm12 = vmmov 0   ;;  %vm556_vm13 = vcmask 1041409   ;;  %vm559_vm14 = vcmask 1042434   ;;  %vm562_vm15 = vcmask 1043459  }
   0x2   :  { %4061 = sst [smem:[#allocation4_spill]] %s4036_s2  ;;  %s4066_s26 = sld [smem:[#allocation3_spill]]  ;;  %v3311_v2 = vshrl.u32 %v71_v0, 7  ;;  %v72_v44 = vand.u32 127, %v71_v0  ;;  %3053 = vset.pattern.permute.xlu0 %v3194_v58 }
   0x3   :  { %4062 = sst [smem:[#allocation5_spill]] %s4037_s5  ;;  %s4067_s28 = sld [smem:[#allocation4_spill]] }
   0x4   :  { %4063 = sst [smem:[#allocation6_spill]] %s4038_s3  ;;  %v90_v5 = vsub.s32 2, %v3311_v2  ;;  %v3321_v6 = vsub.s32 0, %v3311_v2  ;;  %v97_v7 = vsub.s32 3, %v3311_v2  ;;  %v3325_v8 = vsub.s32 1, %v3311_v2  ;;  %s4068_s24 = sld [smem:[#allocation5_spill]] }
   0x5   :  { %4064 = sst [smem:[#allocation7_spill]] %s4039_s6  ;;  %v111_v14 = vsub.s32 5, %v3311_v2  ;;  %v104_v15 = vsub.s32 4, %v3311_v2  ;;  %v125_v17 = vsub.s32 7, %v3311_v2  ;;  %v118_v18 = vsub.s32 6, %v3311_v2 }
   0x6   :  { %4065 = sst [smem:[#allocation8_spill]] %s4040_s4  ;;  %s4069_s4 = sld [smem:[#allocation6_spill]] }
   0x7   :  { %s4071_s3 = sld [smem:[#allocation8_spill]] }
   0x8   :  { %v73_v1 = vld [vmem:[%s4066_s26] sm:$0xff]  ;;  %s4070_s26 = sld [smem:[#allocation7_spill]] }
   0x9   :  { %v3054_v3 = vld [vmem:[%s4067_s28] sm:$0xff]   ;;  %v3055_v4 = vld [vmem:[%s4067_s28 + $0x8] sm:$0xff]   ;;  %v3056_v9 = vld [vmem:[%s4067_s28 + $0x10] sm:$0xff]   ;;  %v91_v10 = vrot.slane %v73_v1, %v90_v5  ;;  %v77_v11 = vrot.slane %v73_v1, %v3321_v6  ;;  %v98_v12 = vrot.slane %v73_v1, %v97_v7  ;;  %v84_v13 = vrot.slane %v73_v1, %v3325_v8 }
   0xa   :  { %2861 = vmatprep.subr.bf16.mxu0 %v3054_v3  ;;  %v3057_v16 = vld [vmem:[%s4067_s28 + $0x18] sm:$0xff]   ;;  %v112_v19 = vrot.slane %v73_v1, %v111_v14  ;;  %v105_v20 = vrot.slane %v73_v1, %v104_v15  ;;  %v3062_v21 = vld [vmem:[%s4068_s24 + $0x4] ss:$8 sps:$4 sm:$0xff]   ;;  %v3064_v22 = vld [vmem:[%s4068_s24] ss:$8 sps:$4 sm:$0xff]   ;;  %v126_v26 = vrot.slane %v73_v1, %v125_v17  ;;  %v119_v27 = vrot.slane %v73_v1, %v118_v18 }
   0xb   :  { %2862 = vmatpush3.bf16.msra.mxu0 %v3054_v3  ;;  %93 = vbcast.lane.b32.xlu1 %v91_v10, 256  ;;  %v3058_v23 = vld [vmem:[%s4067_s28 + $0x20] sm:$0xff]   ;;  %v3065_v24 = vld [vmem:[%s4068_s24 + $0x14] ss:$8 sps:$4 sm:$0xff]   ;;  %v3067_v25 = vld [vmem:[%s4068_s24 + $0x10] ss:$8 sps:$4 sm:$0xff]  }
   0xc   :  { %2863 = vmatprep.subr.bf16.mxu0 %v3055_v4  ;;  %79 = vbcast.lane.b32.xlu0 %v77_v11, 256  ;;  %v3068_v28 = vld [vmem:[%s4068_s24 + $0x24] ss:$8 sps:$4 sm:$0xff]   ;;  %v3070_v30 = vld [vmem:[%s4068_s24 + $0x20] ss:$8 sps:$4 sm:$0xff]   ;;  %v3060_v32 = vld [vmem:[%s4067_s28 + $0x30] sm:$0xff]  }
   0xd   :  { %419 = vmatprep.subr.bf16.mxu1 %v3062_v21  ;;  %v3059_v29 = vld [vmem:[%s4067_s28 + $0x28] sm:$0xff]   ;;  %v3071_v31 = vld [vmem:[%s4068_s24 + $0x34] ss:$8 sps:$4 sm:$0xff]   ;;  %v3073_v33 = vld [vmem:[%s4068_s24 + $0x30] ss:$8 sps:$4 sm:$0xff]  }
   0xe   :  { %420 = vmatpush1.bf16.msra.mxu1 %v3064_v22  ;;  %v3074_v34 = vld [vmem:[%s4068_s24 + $0x44] ss:$8 sps:$4 sm:$0xff]   ;;  %v3061_v35 = vld [vmem:[%s4067_s28 + $0x38] sm:$0xff]   ;;  %v3076_v36 = vld [vmem:[%s4068_s24 + $0x40] ss:$8 sps:$4 sm:$0xff]  }
   0xf   :  { %2864 = vmatpush3.bf16.msra.mxu0 %v3055_v4  ;;  %100 = vbcast.lane.b32.xlu1 %v98_v12, 256  ;;  %v3078_v37 = vld [vmem:[%s4068_s24 + $0x54] ss:$8 sps:$4 sm:$0xff]   ;;  %v3080_v38 = vld [vmem:[%s4068_s24 + $0x50] ss:$8 sps:$4 sm:$0xff]   ;;  %v3077_v47 = vld [vmem:[%s4069_s4] sm:$0xff]  }
  0x10   :  { %2865 = vmatprep.subr.bf16.mxu0 %v3056_v9  ;;  %86 = vbcast.lane.b32.xlu0 %v84_v13, 256  ;;  %v3082_v39 = vld [vmem:[%s4068_s24 + $0x64] ss:$8 sps:$4 sm:$0xff]   ;;  %v3084_v41 = vld [vmem:[%s4068_s24 + $0x60] ss:$8 sps:$4 sm:$0xff]   ;;  %v3085_v54 = vld [vmem:[%s4069_s4 + $0x10] sm:$0xff]  }
  0x11   :  { %421 = vmatprep.subr.bf16.mxu1 %v3065_v24  ;;  %v3081_v51 = vld [vmem:[%s4069_s4 + $0x8] sm:$0xff]   ;;  %v3086_v55 = vld [vmem:[%s4068_s24 + $0x74] ss:$8 sps:$4 sm:$0xff]   ;;  %v3088_v56 = vld [vmem:[%s4068_s24 + $0x70] ss:$8 sps:$4 sm:$0xff]  }
  0x12   :  { %422 = vmatpush1.bf16.msra.mxu1 %v3067_v25  ;;  %v3089_v57 = vld [vmem:[%s4069_s4 + $0x18] sm:$0xff]   ;;  %v3090_v59 = vld [vmem:[%s4069_s4 + $0x20] sm:$0xff]   ;;  %v3091_v60 = vld [vmem:[%s4069_s4 + $0x28] sm:$0xff]  }
  0x13   :  { %2866 = vmatpush3.bf16.msra.mxu0 %v3056_v9  ;;  %114 = vbcast.lane.b32.xlu1 %v112_v19, 256  ;;  %v3092_v61 = vld [vmem:[%s4069_s4 + $0x30] sm:$0xff]   ;;  %v3093_v62 = vld [vmem:[%s4069_s4 + $0x38] sm:$0xff]  }
  0x14   :  { %2867 = vmatprep.subr.bf16.mxu0 %v3057_v16  ;;  %107 = vbcast.lane.b32.xlu0 %v105_v20, 256 }
  0x15   :  { %423 = vmatprep.subr.bf16.mxu1 %v3068_v28 }
  0x16   :  { %424 = vmatpush1.bf16.msra.mxu1 %v3070_v30 }
  0x17   :  { %2868 = vmatpush3.bf16.msra.mxu0 %v3057_v16  ;;  %128 = vbcast.lane.b32.xlu1 %v126_v26, 256 }
  0x18   :  { %2869 = vmatprep.subr.bf16.mxu0 %v3058_v23  ;;  %121 = vbcast.lane.b32.xlu0 %v119_v27, 256 }
  0x19   :  { %425 = vmatprep.subr.bf16.mxu1 %v3071_v31 }
  0x1a   :  { %426 = vmatpush1.bf16.msra.mxu1 %v3073_v33 }
  0x1b   :  { %2870 = vmatpush3.bf16.msra.mxu0 %v3058_v23  ;;  %427 = vmatprep.subr.bf16.mxu1 %v3074_v34 }
  0x1c   :  { %2871 = vmatprep.subr.bf16.mxu0 %v3059_v29 }
  0x1e   :  { %428 = vmatpush1.bf16.msra.mxu1 %v3076_v36 }
  0x1f   :  { %2872 = vmatpush3.bf16.msra.mxu0 %v3059_v29  ;;  %429 = vmatprep.subr.bf16.mxu1 %v3078_v37 }
  0x20   :  { %2873 = vmatprep.subr.bf16.mxu0 %v3060_v32 }
  0x22   :  { %430 = vmatpush1.bf16.msra.mxu1 %v3080_v38 }
  0x23   :  { %2874 = vmatpush3.bf16.msra.mxu0 %v3060_v32  ;;  %431 = vmatprep.subr.bf16.mxu1 %v3082_v39 }
  0x24   :  { %2875 = vmatprep.subr.bf16.mxu0 %v3061_v35 }
  0x26   :  { %432 = vmatpush1.bf16.msra.mxu1 %v3084_v41 }
  0x27   :  { %2876 = vmatpush3.bf16.msra.mxu0 %v3061_v35  ;;  %433 = vmatprep.subr.bf16.mxu1 %v3086_v55 }
  0x28   :  { %2885 = vmatprep.subr.bf16.mxu0 %v3192_v40 }
  0x2a   :  { %434 = vmatpush1.bf16.msra.mxu1 %v3088_v56 }
  0x2b   :  { %2905 = vmatprep.subr.bf16.mxu1 %v3192_v40 }
  0x7d   :  { %v94_v42 = vpop.permute.xlu1 %93 }
  0x7e   :  { %v80_v43 = vpop.permute.xlu0 %79  ;;  %vm132_vm0 = vcmp.eq.s32.totalorder %v94_v42, %v72_v44 }
  0x7f   :  { %vm130_vm3 = vcmp.eq.s32.totalorder %v80_v43, %v72_v44 }
  0x81   :  { %v101_v45 = vpop.permute.xlu1 %100 }
  0x82   :  { %v87_v46 = vpop.permute.xlu0 %86  ;;  %vm133_vm1 = vcmp.eq.s32.totalorder %v101_v45, %v72_v44 }
  0x83   :  { %vm131_vm2 = vcmp.eq.s32.totalorder %v87_v46, %v72_v44  ;;  %vm2760_vm4 = vmpackc.low %vm133_vm1, %vm132_vm0  ;;  %vm565_vm0 = vcmask 1044484   ;;  %vm568_vm1 = vcmask 1045509   ;;  %v327_v46 = vld [vmem:[%s4070_s26] sm:$0x3] }
  0x84   :  { %vm2758_vm5 = vmpackc.low %vm131_vm2, %vm130_vm3  ;;  %vm571_vm2 = vcmask 1046534   ;;  %vm574_vm3 = vcmask 1047559   ;;  %v3507_v56 = vrot.slane %v327_v46, %v3325_v8 }
  0x85   :  { %2877 = vmatprep.mubr.msk.bf16.mxu0 %vm2758_vm5, %v3193_v48  ;;  %v115_v49 = vpop.permute.xlu1 %114  ;;  %vm1114_vm5 = vcmask 57344  }
  0x86   :  { %v108_v50 = vpop.permute.xlu0 %107  ;;  %2878 = vmatmul.mubr.msk.bf16.vlgmr.msra.gmra.mrb[0].mxu0 %vm2760_vm4, %v3193_v48  ;;  %vm135_vm6 = vcmp.eq.s32.totalorder %v115_v49, %v72_v44  ;;  %vm1215_vm4 = vcmask 1043456  }
  0x87   :  { %vm134_vm7 = vcmp.eq.s32.totalorder %v108_v50, %v72_v44  ;;  %2886 = vmatpush3.bf16.msra.mxu0 %v3077_v47  ;;  %v3497_v47 = vrot.slane %v327_v46, %v3321_v6 }
  0x88   :  { %vm2762_vm8 = vmpackc.low %vm135_vm6, %vm134_vm7  ;;  %2887 = vmatprep.subr.bf16.mxu0 %v3192_v40  ;;  %vm1211_vm6 = vcmask 64512  }
  0x89   :  { %2881 = vmatprep.mubr.msk.bf16.mxu0 %vm2762_vm8, %v3193_v48  ;;  %v129_v52 = vpop.permute.xlu1 %128 }
  0x8a   :  { %v122_v53 = vpop.permute.xlu0 %121  ;;  %vm137_vm9 = vcmp.eq.s32.totalorder %v129_v52, %v72_v44 }
  0x8b   :  { %vm136_vm10 = vcmp.eq.s32.totalorder %v122_v53, %v72_v44  ;;  %2888 = vmatpush3.bf16.msra.mxu0 %v3081_v51 }
  0x8c   :  { %vm2764_vm11 = vmpackc.low %vm137_vm9, %vm136_vm10  ;;  %2889 = vmatprep.subr.bf16.mxu0 %v3192_v40 }
  0x8e   :  { %2882 = vmatmul.mubr.msk.bf16.gmra.mrb[4].mxu0 %vm2764_vm11, %v3193_v48 }
  0x8f   :  { %2890 = vmatpush3.bf16.msra.mxu0 %v3085_v54  ;;  %2901 = vmatprep.mubr.msk.bf16.mxu0 %vm3195_vm12, %v3192_v40 }
  0x90   :  { %2891 = vmatprep.subr.bf16.mxu0 %v3192_v40 }
  0x93   :  { %2892 = vmatpush3.bf16.msra.mxu0 %v3089_v57 }
  0x94   :  { %2893 = vmatprep.subr.bf16.mxu0 %v3192_v40 }
  0x97   :  { %2894 = vmatpush3.bf16.msra.mxu0 %v3090_v59  ;;  %v3196_v59 = vmov 1966171168  }
  0x98   :  { %2895 = vmatprep.subr.bf16.mxu0 %v3192_v40 }
  0x9b   :  { %2896 = vmatpush3.bf16.msra.mxu0 %v3091_v60  ;;  %v669_v60 = vunpack.c.l.s4 %v3196_v59 }
  0x9c   :  { %2897 = vmatprep.subr.bf16.mxu0 %v3192_v40 }
  0x9f   :  { %2898 = vmatpush3.bf16.msra.mxu0 %v3092_v61 }
  0xa0   :  { %2899 = vmatprep.subr.bf16.mxu0 %v3192_v40 }
  0xa3   :  { %2900 = vmatpush3.bf16.msra.mxu0 %v3093_v62 }
  0xa4   :  { %2911 = vmatprep.subr.bf16.mxu0 %v3192_v40 }
 0x159   :  { %v3439_v63 = vpop.f32.mrb[0].mxu0 }
 0x15a   :  { %v510_v0 = vpack.c.bf16 %v3439_v63, %v3439_v63  ;;  %v3443_v1 = vpop.f32.mrb[1].mxu0 }
 0x15b   :  { %v3445_v3 = vpop.f32.mrb[2].mxu0  ;;  %v508_v9 = vpack.c.bf16 %v3443_v1, %v3443_v1 }
 0x15c   :  { %v308_v4 = vpack.c.bf16 %v3445_v3, %v3439_v63  ;;  %v511_v5 = vpack.c.bf16 %v3445_v3, %v3445_v3  ;;  %v3451_v7 = vpop.f32.mrb[3].mxu0  ;;  %v549_v12 = vunpack.c.l.b16 %v510_v0 }
 0x15d   :  { %v307_v10 = vpack.c.bf16 %v3451_v7, %v3443_v1  ;;  %v509_v11 = vpack.c.bf16 %v3451_v7, %v3451_v7  ;;  %v547_v15 = vunpack.c.l.b16 %v508_v9 }
 0x15e   :  { %v550_v13 = vunpack.c.l.b16 %v511_v5  ;;  %v558_v18 = vrot.slane %v549_v12, 6 }
 0x15f   :  { %v548_v14 = vunpack.c.l.b16 %v509_v11  ;;  %452 = vmatmul.mubr.bf16.vlgmr.msra.gmra.mrb[0].mxu1 %v307_v10  ;;  %v670_v10 = vunpack.c.0.s8 %v669_v60 }
 0x160   :  { %461 = vmatprep.mubr.bf16.mxu1 %v3194_v58  ;;  %v561_v21 = vrot.slane %v550_v13, 5  ;;  %v2682_v13 = vld [vmem:[%s4071_s3] ss:$0 sm:$0xff] }
 0x161   :  { %v555_v16 = vrot.slane %v548_v14, 7  ;;  %v3460_v17 = vpop.f32.mrb[4].mxu0 }
 0x162   :  { %v514_v19 = vpack.c.bf16 %v3460_v17, %v3460_v17  ;;  %v3464_v20 = vpop.f32.mrb[5].mxu0 }
 0x163   :  { %v557_v22 = vsel %vm556_vm13, %v555_v16, %v547_v15  ;;  %v512_v23 = vpack.c.bf16 %v3464_v20, %v3464_v20  ;;  %v3469_v24 = vpop.f32.mrb[6].mxu0  ;;  %v3522_v16 = vsub.s32 %v670_v10, %v3311_v2 }
 0x164   :  { %v560_v25 = vsel %vm559_vm14, %v558_v18, %v557_v22  ;;  %v310_v26 = vpack.c.bf16 %v3469_v24, %v3460_v17  ;;  %v515_v27 = vpack.c.bf16 %v3469_v24, %v3469_v24  ;;  %v3476_v28 = vpop.f32.mrb[7].mxu0  ;;  %v553_v33 = vunpack.c.l.b16 %v514_v19 }
 0x165   :  { %v551_v29 = vunpack.c.l.b16 %v512_v23  ;;  %v563_v30 = vsel %vm562_vm15, %v561_v21, %v560_v25  ;;  %v309_v31 = vpack.c.bf16 %v3476_v28, %v3464_v20  ;;  %v513_v32 = vpack.c.bf16 %v3476_v28, %v3476_v28 }
 0x166   :  { %v554_v35 = vunpack.c.l.b16 %v515_v27  ;;  %v570_v39 = vrot.slane %v553_v33, 2 }
 0x167   :  { %v564_v34 = vrot.slane %v551_v29, 4  ;;  %v552_v36 = vunpack.c.l.b16 %v513_v32  ;;  %462 = vmatmul.mubr.bf16.gmra.mrb[4].mxu1 %v308_v4 }
 0x168   :  { %471 = vmatprep.mubr.bf16.mxu1 %v3194_v58  ;;  %v573_v41 = vrot.slane %v554_v35, 1 }
 0x169   :  { %v566_v37 = vsel %vm565_vm0, %v564_v34, %v563_v30  ;;  %v567_v38 = vrot.slane %v552_v36, 3 }
 0x16b   :  { %v569_v42 = vsel %vm568_vm1, %v567_v38, %v566_v37 }
 0x16c   :  { %v572_v43 = vsel %vm571_vm2, %v570_v39, %v569_v42 }
 0x16d   :  { %v575_v44 = vsel %vm574_vm3, %v573_v41, %v572_v43 }
 0x16e   :  { %v576_v45 = vpack.c.b16 %v575_v44, %v575_v44 }
 0x16f   :  { %472 = vmatmul.mubr.bf16.gmra.mrb[8].mxu1 %v309_v31 }
 0x170   :  { %2902 = vmatmul.mubr.bf16.vlgmr.msra.gmra.mrb[8].mxu0 %v576_v45  ;;  %481 = vmatprep.mubr.bf16.mxu1 %v3194_v58 }
 0x171   :  { %2913 = vmatprep.mubr.msk.bf16.mxu0 %vm3195_vm12, %v3192_v40 }
 0x177   :  { %482 = vmatmul.mubr.bf16.gmra.mrb[12].mxu1 %v310_v26 }
 0x178   :  { %2907 = vmatprep.mubr.msk.bf16.mxu1 %vm3195_vm12, %v3192_v40 }
 0x232   :  { %v453_v48 = vpop.f32.mrb[0].mxu1 }
 0x233   :  { %v454_v49 = vadd.f32 %v453_v48, %v3497_v47  ;;  %v3500_v50 = vpop.f32.mrb[1].mxu1 }
 0x234   :  { %v457_v51 = vpop.f32.mrb[2].mxu1 }
 0x235   :  { %v492_v52 = vpack.c.bf16 %v454_v49, %v454_v49  ;;  %v458_v53 = vadd.f32 %v457_v51, %v3497_v47  ;;  %v3503_v54 = vpop.f32.mrb[3].mxu1 }
 0x237   :  { %v493_v55 = vpack.c.bf16 %v458_v53, %v458_v53  ;;  %2906 = vmatpush3.bf16.xpose.msra.mxu1 %v492_v52 }
 0x238   :  { %2917 = vmatprep.subr.bf16.mxu1 %v3192_v40 }
 0x239   :  { %2912 = vmatpush3.bf16.xpose.msra.mxu0 %v493_v55 }
 0x23a   :  { %v463_v57 = vpop.f32.mrb[4].mxu1  ;;  %2923 = vmatprep.subr.bf16.mxu0 %v3192_v40 }
 0x23b   :  { %v465_v61 = vpop.f32.mrb[5].mxu1  ;;  %v464_v33 = vadd.f32 %v463_v57, %v3497_v47 }
 0x23c   :  { %v466_v62 = vadd.f32 %v465_v61, %v3507_v56  ;;  %v467_v0 = vpop.f32.mrb[6].mxu1 }
 0x23d   :  { %v469_v4 = vpop.f32.mrb[7].mxu1  ;;  %v468_v36 = vadd.f32 %v467_v0, %v3497_v47  ;;  %v494_v44 = vpack.c.bf16 %v464_v33, %v464_v33 }
 0x23e   :  { %v502_v5 = vpack.c.bf16 %v466_v62, %v466_v62  ;;  %v470_v9 = vadd.f32 %v469_v4, %v3507_v56 }
 0x23f   :  { %v495_v51 = vpack.c.bf16 %v468_v36, %v468_v36 }
 0x240   :  { %v3513_v11 = vsel %vm1215_vm4, %v502_v5, 0  ;;  %v503_v12 = vpack.c.bf16 %v470_v9, %v470_v9 }
 0x242   :  { %v3519_v14 = vsel %vm1215_vm4, %v503_v12, 0  ;;  %v473_v15 = vpop.f32.mrb[8].mxu1 }
 0x243   :  { %v475_v18 = vpop.f32.mrb[9].mxu1  ;;  %v660_v19 = vpop.f32.mrb[8].mxu0  ;;  %v474_v57 = vadd.f32 %v473_v15, %v3497_v47 }
 0x244   :  { %v476_v21 = vadd.f32 %v475_v18, %v3507_v56  ;;  %v661_v22 = vadd.f32 %v2682_v13, %v660_v19  ;;  %v477_v23 = vpop.f32.mrb[10].mxu1  ;;  %v2903_v25 = vpop.f32.mrb[9].mxu0 }
 0x245   :  { %v479_v26 = vpop.f32.mrb[11].mxu1  ;;  %v663_v27 = vpop.f32.mrb[10].mxu0  ;;  %v478_v4 = vadd.f32 %v477_v23, %v3497_v47  ;;  %v496_v10 = vpack.c.bf16 %v474_v57, %v474_v57 }
 0x246   :  { %v504_v29 = vpack.c.bf16 %v476_v21, %v476_v21  ;;  %v674_v30 = vrot.slane %v661_v22, %v3522_v16  ;;  %v480_v31 = vadd.f32 %v479_v26, %v3507_v56  ;;  %v2904_v32 = vpop.f32.mrb[11].mxu0  ;;  %v667_v45 = vcombine.high %v661_v22, %v661_v22 }
 0x247   :  { %v497_v15 = vpack.c.bf16 %v478_v4, %v478_v4  ;;  %v456_v27 = vadd.f32 %v3500_v50, %v3507_v56 }
 0x248   :  { %v3529_v2 = vsel %vm1215_vm4, %v504_v29, 0  ;;  %v682_v34 = vcombine.high %v674_v30, %v674_v30  ;;  %v690_v35 = vrot.slane %v674_v30, %v3522_v16  ;;  %v505_v37 = vpack.c.bf16 %v480_v31, %v480_v31 }
 0x249   :  { %v681_v60 = vrot.slane %v667_v45, %v3522_v16  ;;  %v460_v30 = vadd.f32 %v3503_v54, %v3507_v56  ;;  %v500_v32 = vpack.c.bf16 %v456_v27, %v456_v27 }
 0x24a   :  { %v704_v38 = vrot.slane %v682_v34, %v3522_v16  ;;  %v483_v39 = vpop.f32.mrb[12].mxu1  ;;  %v724_v41 = vpack.c.bf16 %v690_v35, %v690_v35  ;;  %v3535_v42 = vsel %vm1215_vm4, %v505_v37, 0  ;;  %v712_v59 = vcombine.high %v690_v35, %v690_v35  ;;  %v732_v35 = vld [vmem:[%s4041_s1] sm:$0xff] }
 0x24b   :  { %v485_v43 = vpop.f32.mrb[13].mxu1  ;;  %v683_v12 = vcombine.high %v681_v60, %v681_v60  ;;  %v697_v18 = vrot.slane %v681_v60, %v3522_v16  ;;  %v484_v21 = vadd.f32 %v483_v39, %v3497_v47  ;;  %v501_v50 = vpack.c.bf16 %v460_v30, %v460_v30 }
 0x24c   :  { %v486_v46 = vadd.f32 %v485_v43, %v3507_v56  ;;  %v487_v48 = vpop.f32.mrb[14].mxu1  ;;  %v725_v49 = vpack.c.bf16 %v704_v38, %v704_v38  ;;  %2908 = vmatmul.mubr.bf16.vlgmr.msra.gmra.mrb[16].mxu1 %v724_v41  ;;  %v714_v0 = vcombine.high %v704_v38, %v704_v38  ;;  %v726_v9 = vpack.c.bf16 %v712_v59, %v712_v59 }
 0x24d   :  { %v489_v52 = vpop.f32.mrb[15].mxu1  ;;  %2918 = vmatpush3.bf16.xpose.msra.mxu1 %v494_v44  ;;  %2919 = vmatprep.mubr.msk.bf16.mxu1 %vm3195_vm12, %v3192_v40  ;;  %v711_v19 = vrot.slane %v683_v12, %v3522_v16  ;;  %v488_v22 = vadd.f32 %v487_v48, %v3497_v47  ;;  %v728_v23 = vpack.c.bf16 %v697_v18, %v697_v18  ;;  %v1217_v54 = vsel %vm1215_vm4, %v500_v32, 0 }
 0x24e   :  { %v506_v53 = vpack.c.bf16 %v486_v46, %v486_v46  ;;  %v490_v55 = vadd.f32 %v489_v52, %v3507_v56  ;;  %2914 = vmatmul.mubr.bf16.vlgmr.msra.gmra.mrb[12].mxu0 %v725_v49  ;;  %2929 = vmatprep.subr.bf16.mxu1 %v3192_v40  ;;  %v727_v13 = vpack.c.bf16 %v714_v0, %v714_v0  ;;  %v1263_v56 = vsel %vm1215_vm4, %v501_v50, 0 }
 0x24f   :  { %2924 = vmatpush3.bf16.xpose.msra.mxu0 %v495_v51  ;;  %2925 = vmatprep.mubr.msk.bf16.mxu0 %vm3195_vm12, %v3192_v40  ;;  %v498_v25 = vpack.c.bf16 %v484_v21, %v484_v21  ;;  %v729_v26 = vpack.c.bf16 %v711_v19, %v711_v19  ;;  %v499_v29 = vpack.c.bf16 %v488_v22, %v488_v22  ;;  %v733_v36 = vcvt.s32.f32 %v732_v35 }
 0x250   :  { %v3544_v61 = vsel %vm1215_vm4, %v506_v53, 0  ;;  %v507_v62 = vpack.c.bf16 %v490_v55, %v490_v55  ;;  %2935 = vmatprep.subr.bf16.mxu0 %v3192_v40  ;;  %v713_v47 = vcombine.high %v697_v18, %v697_v18  ;;  %v715_v31 = vcombine.high %v711_v19, %v711_v19 }
 0x251   :  { %v734_v37 = vsub.f32 1.0, %v733_v36 }
 0x252   :  { %v3552_v5 = vsel %vm1215_vm4, %v507_v62, 0  ;;  %v730_v33 = vpack.c.bf16 %v713_v47, %v713_v47  ;;  %v731_v34 = vpack.c.bf16 %v715_v31, %v715_v31 }
 0x253   :  { %v735_v38 = vmul.f32 -1e+09, %v734_v37 }
 0x254   :  { %2920 = vmatmul.mubr.bf16.vlgmr.msra.gmra.mrb[20].mxu1 %v726_v9 }
 0x255   :  { %2930 = vmatpush3.bf16.xpose.msra.mxu1 %v496_v10  ;;  %2931 = vmatprep.mubr.msk.bf16.mxu1 %vm3195_vm12, %v3192_v40  ;;  %v744_v39 = vrot.slane %v735_v38, %v3522_v16  ;;  %v737_v55 = vcombine.high %v735_v38, %v735_v38 }
 0x256   :  { %2926 = vmatmul.mubr.bf16.vlgmr.msra.gmra.mrb[16].mxu0 %v727_v13  ;;  %2941 = vmatprep.subr.bf16.mxu1 %v3192_v40 }
 0x257   :  { %2936 = vmatpush3.bf16.xpose.msra.mxu0 %v497_v15  ;;  %2937 = vmatprep.mubr.msk.bf16.mxu0 %vm3195_vm12, %v3192_v40  ;;  %v752_v41 = vcombine.high %v744_v39, %v744_v39  ;;  %v760_v43 = vrot.slane %v744_v39, %v3522_v16  ;;  %v751_v9 = vrot.slane %v737_v55, %v3522_v16 }
 0x258   :  { %2947 = vmatprep.subr.bf16.mxu0 %v3192_v40 }
 0x259   :  { %v774_v44 = vrot.slane %v752_v41, %v3522_v16  ;;  %v782_v4 = vcombine.high %v760_v43, %v760_v43  ;;  %v753_v22 = vcombine.high %v751_v9, %v751_v9  ;;  %v767_v30 = vrot.slane %v751_v9, %v3522_v16 }
 0x25b   :  { %v784_v10 = vcombine.high %v774_v44, %v774_v44  ;;  %v781_v47 = vrot.slane %v753_v22, %v3522_v16  ;;  %v783_v16 = vcombine.high %v767_v30, %v767_v30 }
 0x25c   :  { %2932 = vmatmul.mubr.bf16.vlgmr.msra.gmra.mrb[24].mxu1 %v728_v23 }
 0x25d   :  { %2942 = vmatpush3.bf16.xpose.msra.mxu1 %v498_v25  ;;  %2943 = vmatprep.mubr.msk.bf16.mxu1 %vm3195_vm12, %v3192_v40 }
 0x25e   :  { %2938 = vmatmul.mubr.bf16.vlgmr.msra.gmra.mrb[20].mxu0 %v729_v26  ;;  %2953 = vmatprep.subr.bf16.mxu1 %v3192_v40 }
 0x25f   :  { %2948 = vmatpush3.bf16.xpose.msra.mxu0 %v499_v29  ;;  %2949 = vmatprep.mubr.msk.bf16.mxu0 %vm3195_vm12, %v3192_v40 }
 0x260   :  { %2959 = vmatprep.subr.bf16.mxu0 %v3192_v40 }
 0x264   :  { %2944 = vmatmul.mubr.bf16.vlgmr.msra.gmra.mrb[28].mxu1 %v730_v33 }
 0x265   :  { %2954 = vmatpush3.bf16.msra.mxu1 %v1217_v54  ;;  %2955 = vmatprep.mubr.msk.bf16.mxu1 %vm3195_vm12, %v3192_v40 }
 0x266   :  { %2950 = vmatmul.mubr.bf16.vlgmr.msra.gmra.mrb[24].mxu0 %v731_v34  ;;  %2965 = vmatprep.subr.bf16.mxu1 %v3192_v40 }
 0x267   :  { %2960 = vmatpush3.bf16.msra.mxu0 %v1263_v56  ;;  %2961 = vmatprep.mubr.msk.bf16.mxu0 %vm3195_vm12, %v3192_v40 }
 0x268   :  { %2971 = vmatprep.subr.bf16.mxu0 %v3192_v40 }
 0x31f   :  { %v828_v45 = vpop.f32.mrb[16].mxu1 }
 0x320   :  { %v3588_v46 = vadd.f32 %v828_v45, %v760_v43  ;;  %v2909_v48 = vpop.f32.mrb[17].mxu1  ;;  %v785_v43 = vcombine.high %v781_v47, %v781_v47 }
 0x321   :  { %v868_v49 = vpop.f32.mrb[12].mxu0  ;;  %v831_v51 = vpop.f32.mrb[18].mxu1 }
 0x322   :  { %v3590_v52 = vadd.f32 %v868_v49, %v774_v44  ;;  %v2915_v53 = vpop.f32.mrb[13].mxu0  ;;  %v2910_v57 = vpop.f32.mrb[19].mxu1  ;;  %v1115_v60 = vsel %vm1114_vm5, %v3588_v46, -inf }
 0x323   :  { %v871_v59 = vpop.f32.mrb[14].mxu0  ;;  %1116 = vmax.xlane.f32.xlu0 %v1115_v60 }
 0x324   :  { %v2916_v62 = vpop.f32.mrb[15].mxu0  ;;  %v1118_v0 = vsel %vm1114_vm5, %v3590_v52, -inf }
 0x325   :  { %1119 = vmax.xlane.f32.xlu1 %v1118_v0 }
 0x327   :  { %v908_v12 = vpop.f32.mrb[20].mxu1 }
 0x328   :  { %v909_v13 = vadd.f32 %v908_v12, %v782_v4  ;;  %v2921_v15 = vpop.f32.mrb[21].mxu1 }
 0x329   :  { %v948_v18 = vpop.f32.mrb[16].mxu0  ;;  %v911_v19 = vpop.f32.mrb[22].mxu1 }
 0x32a   :  { %v2927_v21 = vpop.f32.mrb[17].mxu0  ;;  %v949_v23 = vadd.f32 %v948_v18, %v784_v10  ;;  %v2922_v25 = vpop.f32.mrb[23].mxu1  ;;  %v1121_v27 = vsel %vm1114_vm5, %v909_v13, -inf }
 0x32b   :  { %v951_v26 = vpop.f32.mrb[18].mxu0  ;;  %1122 = vmax.xlane.f32.xlu0 %v1121_v27 }
 0x32c   :  { %v2928_v29 = vpop.f32.mrb[19].mxu0  ;;  %v1124_v31 = vsel %vm1114_vm5, %v949_v23, -inf }
 0x32f   :  { %1125 = vmax.xlane.f32.xlu0 %v1124_v31  ;;  %v988_v32 = vpop.f32.mrb[24].mxu1 }
 0x330   :  { %v989_v50 = vadd.f32 %v988_v32, %v767_v30  ;;  %v2933_v33 = vpop.f32.mrb[25].mxu1 }
 0x331   :  { %v1028_v34 = vpop.f32.mrb[20].mxu0  ;;  %v991_v54 = vpop.f32.mrb[26].mxu1 }
 0x332   :  { %v1029_v56 = vadd.f32 %v1028_v34, %v781_v47  ;;  %v2939_v35 = vpop.f32.mrb[21].mxu0  ;;  %v2934_v36 = vpop.f32.mrb[27].mxu1  ;;  %v1127_v38 = vsel %vm1114_vm5, %v989_v50, -inf }
 0x333   :  { %v1031_v37 = vpop.f32.mrb[22].mxu0  ;;  %1128 = vmax.xlane.f32.xlu1 %v1127_v38 }
 0x334   :  { %v2940_v39 = vpop.f32.mrb[23].mxu0  ;;  %v1130_v41 = vsel %vm1114_vm5, %v1029_v56, -inf }
 0x335   :  { %1131 = vmax.xlane.f32.xlu0 %v1130_v41 }
 0x337   :  { %v1068_v44 = vpop.f32.mrb[28].mxu1 }
 0x338   :  { %v1069_v45 = vadd.f32 %v1068_v44, %v783_v16  ;;  %v2945_v48 = vpop.f32.mrb[29].mxu1 }
 0x339   :  { %v1108_v49 = vpop.f32.mrb[24].mxu0  ;;  %v1071_v51 = vpop.f32.mrb[30].mxu1 }
 0x33a   :  { %v1109_v53 = vadd.f32 %v1108_v49, %v785_v43  ;;  %v2951_v55 = vpop.f32.mrb[25].mxu0  ;;  %v2946_v57 = vpop.f32.mrb[31].mxu1  ;;  %v1133_v60 = vsel %vm1114_vm5, %v1069_v45, -inf }
 0x33b   :  { %v1111_v59 = vpop.f32.mrb[26].mxu0  ;;  %1134 = vmax.xlane.f32.xlu1 %v1133_v60 }
 0x33c   :  { %v2952_v62 = vpop.f32.mrb[27].mxu0  ;;  %v1136_v0 = vsel %vm1114_vm5, %v1109_v53, -inf }
 0x33d   :  { %1137 = vmax.xlane.f32.xlu0 %v1136_v0 }
 0x3b0   :  { %v1117_v4 = vpop.xlane.xlu0 %1116 }
 0x3b1   :  { %v1139_v9 = vsub.f32 %v3588_v46, %v1117_v4 }
 0x3b2   :  { %v1120_v10 = vpop.xlane.xlu1 %1119 }
 0x3b3   :  { %v1140_v12 = vsub.f32 %v3590_v52, %v1120_v10  ;;  %v1147_v15 = vmul.f32 1.442695, %v1139_v9 }
 0x3b5   :  { %v1149_v18 = vmul.f32 1.442695, %v1140_v12  ;;  %3150 = vpow2.f32 %v1147_v15 }
 0x3b7   :  { %3152 = vpow2.f32 %v1149_v18 }
 0x3b8   :  { %v1123_v19 = vpop.xlane.xlu0 %1122 }
 0x3b9   :  { %v1141_v21 = vsub.f32 %v909_v13, %v1123_v19 }
 0x3bb   :  { %v1151_v22 = vmul.f32 1.442695, %v1141_v21 }
 0x3bc   :  { %v1126_v25 = vpop.xlane.xlu0 %1125 }
 0x3bd   :  { %3154 = vpow2.f32 %v1151_v22  ;;  %v1142_v26 = vsub.f32 %v949_v23, %v1126_v25 }
 0x3bf   :  { %v3151_v27 = vpop.eup %3150  ;;  %v1153_v29 = vmul.f32 1.442695, %v1142_v26 }
 0x3c0   :  { %v1129_v47 = vpop.xlane.xlu1 %1128  ;;  %v1163_v31 = vsel %vm1114_vm5, %v3151_v27, 0.0 }
 0x3c1   :  { %v3153_v30 = vpop.eup %3152  ;;  %3156 = vpow2.f32 %v1153_v29  ;;  %v1143_v46 = vsub.f32 %v989_v50, %v1129_v47  ;;  %1164 = vadd.xlane.f32.xlu1 %v1163_v31 }
 0x3c2   :  { %v1132_v52 = vpop.xlane.xlu0 %1131  ;;  %v1166_v32 = vsel %vm1114_vm5, %v3153_v30, 0.0 }
 0x3c3   :  { %v1144_v33 = vsub.f32 %v1029_v56, %v1132_v52  ;;  %1167 = vadd.xlane.f32.xlu0 %v1166_v32  ;;  %v1155_v34 = vmul.f32 1.442695, %v1143_v46 }
 0x3c5   :  { %v1157_v13 = vmul.f32 1.442695, %v1144_v33  ;;  %3158 = vpow2.f32 %v1155_v34 }
 0x3c7   :  { %3160 = vpow2.f32 %v1157_v13  ;;  %v3155_v54 = vpop.eup %3154  ;;  %v3095_v13 = vld [vmem:[%s4042_s7 + $0x8] sm:$0xff]  }
 0x3c8   :  { %v1135_v23 = vpop.xlane.xlu1 %1134  ;;  %v1169_v35 = vsel %vm1114_vm5, %v3155_v54, 0.0 }
 0x3c9   :  { %v1145_v36 = vsub.f32 %v1069_v45, %v1135_v23  ;;  %1170 = vadd.xlane.f32.xlu1 %v1169_v35  ;;  %v3098_v23 = vld [vmem:[%s4042_s7 + $0x20] sm:$0xff]   ;;  %v3099_v35 = vld [vmem:[%s4042_s7 + $0x28] sm:$0xff]  }
 0x3ca   :  { %v1138_v37 = vpop.xlane.xlu0 %1137 }
 0x3cb   :  { %v1146_v38 = vsub.f32 %v1109_v53, %v1138_v37  ;;  %v3157_v39 = vpop.eup %3156  ;;  %v1159_v50 = vmul.f32 1.442695, %v1145_v36  ;;  %v3100_v36 = vld [vmem:[%s4042_s7 + $0x30] sm:$0xff]   ;;  %v3101_v37 = vld [vmem:[%s4042_s7 + $0x38] sm:$0xff]  }
 0x3cc   :  { %v1172_v16 = vsel %vm1114_vm5, %v3157_v39, 0.0 }
 0x3cd   :  { %v1161_v41 = vmul.f32 1.442695, %v1146_v38  ;;  %3162 = vpow2.f32 %v1159_v50  ;;  %1173 = vadd.xlane.f32.xlu0 %v1172_v16 }
 0x3cf   :  { %3164 = vpow2.f32 %v1161_v41  ;;  %v3159_v56 = vpop.eup %3158 }
 0x3d0   :  { %v1175_v44 = vsel %vm1114_vm5, %v3159_v56, 0.0 }
 0x3d1   :  { %v3161_v43 = vpop.eup %3160  ;;  %1176 = vadd.xlane.f32.xlu1 %v1175_v44 }
 0x3d2   :  { %v1178_v48 = vsel %vm1114_vm5, %v3161_v43, 0.0 }
 0x3d3   :  { %1179 = vadd.xlane.f32.xlu0 %v1178_v48 }
 0x3d7   :  { %v3613_v45 = vpop.eup %3162 }
 0x3d8   :  { %v1181_v51 = vsel %vm1114_vm5, %v3613_v45, 0.0 }
 0x3d9   :  { %v3615_v49 = vpop.eup %3164  ;;  %1182 = vadd.xlane.f32.xlu1 %v1181_v51 }
 0x3da   :  { %v1184_v53 = vsel %vm1114_vm5, %v3615_v49, 0.0 }
 0x3db   :  { %1185 = vadd.xlane.f32.xlu0 %v1184_v53 }
 0x44e   :  { %v1165_v55 = vpop.xlane.xlu1 %1164 }
 0x44f   :  { %3166 = vrcp.f32 %v1165_v55 }
 0x450   :  { %v1168_v57 = vpop.xlane.xlu0 %1167 }
 0x451   :  { %3168 = vrcp.f32 %v1168_v57 }
 0x456   :  { %v1171_v59 = vpop.xlane.xlu1 %1170 }
 0x457   :  { %3170 = vrcp.f32 %v1171_v59 }
 0x459   :  { %v3167_v60 = vpop.eup %3166 }
 0x45a   :  { %v1195_v0 = vmul.f32 %v3167_v60, %v3151_v27  ;;  %v1174_v4 = vpop.xlane.xlu0 %1173 }
 0x45b   :  { %v3169_v62 = vpop.eup %3168  ;;  %3172 = vrcp.f32 %v1174_v4 }
 0x45c   :  { %v1196_v9 = vmul.f32 %v3169_v62, %v3153_v30  ;;  %v1203_v10 = vpack.c.bf16 %v1195_v0, %v1195_v0 }
 0x45e   :  { %v1204_v12 = vpack.c.bf16 %v1196_v9, %v1196_v9  ;;  %2956 = vmatmul.mubr.msk.bf16.vlgmr.msra.gmra.mrb[32].mxu1 %vm1211_vm6, %v1203_v10  ;;  %v1177_v15 = vpop.xlane.xlu1 %1176 }
 0x45f   :  { %2966 = vmatpush3.bf16.msra.mxu1 %v3513_v11  ;;  %3174 = vrcp.f32 %v1177_v15  ;;  %2967 = vmatprep.mubr.msk.bf16.mxu1 %vm3195_vm12, %v3192_v40 }
 0x460   :  { %2962 = vmatmul.mubr.msk.bf16.vlgmr.msra.gmra.mrb[28].mxu0 %vm1211_vm6, %v1204_v12  ;;  %v1180_v18 = vpop.xlane.xlu0 %1179  ;;  %2977 = vmatprep.subr.bf16.mxu1 %v3192_v40 }
 0x461   :  { %2972 = vmatpush3.bf16.msra.mxu0 %v3519_v14  ;;  %3176 = vrcp.f32 %v1180_v18  ;;  %v3171_v19 = vpop.eup %3170  ;;  %2973 = vmatprep.mubr.msk.bf16.mxu0 %vm3195_vm12, %v3192_v40 }
 0x462   :  { %v1197_v21 = vmul.f32 %v3171_v19, %v3155_v54  ;;  %2983 = vmatprep.subr.bf16.mxu0 %v3192_v40  ;;  %v3096_v54 = vld [vmem:[%s4042_s7 + $0x10] sm:$0xff]  }
 0x464   :  { %v1205_v11 = vpack.c.bf16 %v1197_v21, %v1197_v21 }
 0x465   :  { %v3173_v22 = vpop.eup %3172 }
 0x466   :  { %v1198_v25 = vmul.f32 %v3173_v22, %v3157_v39  ;;  %2968 = vmatmul.mubr.msk.bf16.vlgmr.msra.gmra.mrb[36].mxu1 %vm1211_vm6, %v1205_v11  ;;  %v1183_v26 = vpop.xlane.xlu1 %1182 }
 0x467   :  { %2978 = vmatpush3.bf16.msra.mxu1 %v3529_v2  ;;  %3178 = vrcp.f32 %v1183_v26  ;;  %2979 = vmatprep.mubr.msk.bf16.mxu1 %vm3195_vm12, %v3192_v40 }
 0x468   :  { %v1186_v14 = vpop.xlane.xlu0 %1185  ;;  %v1206_v27 = vpack.c.bf16 %v1198_v25, %v1198_v25  ;;  %2989 = vmatprep.subr.bf16.mxu1 %v3192_v40 }
 0x469   :  { %3180 = vrcp.f32 %v1186_v14  ;;  %v3175_v29 = vpop.eup %3174 }
 0x46a   :  { %v1199_v47 = vmul.f32 %v3175_v29, %v3159_v56  ;;  %2974 = vmatmul.mubr.msk.bf16.vlgmr.msra.gmra.mrb[32].mxu0 %vm1211_vm6, %v1206_v27 }
 0x46b   :  { %v3177_v30 = vpop.eup %3176  ;;  %2984 = vmatpush3.bf16.msra.mxu0 %v3535_v42  ;;  %2985 = vmatprep.mubr.msk.bf16.mxu0 %vm3195_vm12, %v3192_v40 }
 0x46c   :  { %v1200_v2 = vmul.f32 %v3177_v30, %v3161_v43  ;;  %v1207_v31 = vpack.c.bf16 %v1199_v47, %v1199_v47  ;;  %2995 = vmatprep.subr.bf16.mxu0 %v3192_v40 }
 0x46e   :  { %2980 = vmatmul.mubr.msk.bf16.vlgmr.msra.gmra.mrb[40].mxu1 %vm1211_vm6, %v1207_v31  ;;  %v1208_v46 = vpack.c.bf16 %v1200_v2, %v1200_v2 }
 0x46f   :  { %2990 = vmatpush3.bf16.msra.mxu1 %v3544_v61  ;;  %2991 = vmatprep.mubr.msk.bf16.mxu1 %vm3195_vm12, %v3192_v40 }
 0x470   :  { %3001 = vmatprep.subr.bf16.mxu1 %v3192_v40 }
 0x471   :  { %v3179_v52 = vpop.eup %3178 }
 0x472   :  { %v1201_v42 = vmul.f32 %v3179_v52, %v3613_v45  ;;  %2986 = vmatmul.mubr.msk.bf16.vlgmr.msra.gmra.mrb[36].mxu0 %vm1211_vm6, %v1208_v46 }
 0x473   :  { %v3181_v32 = vpop.eup %3180  ;;  %2996 = vmatpush3.bf16.msra.mxu0 %v3552_v5  ;;  %2997 = vmatprep.mubr.msk.bf16.mxu0 %vm3195_vm12, %v3192_v40  ;;  %v3094_v5 = vld [vmem:[%s4042_s7] sm:$0xff]  }
 0x474   :  { %v1202_v33 = vmul.f32 %v3181_v32, %v3615_v49  ;;  %v1209_v61 = vpack.c.bf16 %v1201_v42, %v1201_v42 }
 0x476   :  { %2992 = vmatmul.mubr.msk.bf16.vlgmr.msra.gmra.mrb[44].mxu1 %vm1211_vm6, %v1209_v61  ;;  %v1210_v34 = vpack.c.bf16 %v1202_v33, %v1202_v33 }
 0x477   :  { %3017 = vmatprep.mubr.msk.bf16.mxu1 %vm3195_vm12, %v3192_v40  ;;  %3002 = vmatpush3.bf16.msra.mxu1 %v3094_v5 }
 0x478   :  { %3003 = vmatprep.subr.bf16.mxu1 %v3192_v40 }
 0x47a   :  { %2998 = vmatmul.mubr.msk.bf16.vlgmr.msra.gmra.mrb[40].mxu0 %vm1211_vm6, %v1210_v34 }
 0x47b   :  { %2077 = vmatprep.mubr.bf16.mxu0 %v3194_v58  ;;  %3004 = vmatpush3.bf16.msra.mxu1 %v3095_v13  ;;  %v3097_v58 = vld [vmem:[%s4042_s7 + $0x18] sm:$0xff]  }
 0x47c   :  { %3005 = vmatprep.subr.bf16.mxu1 %v3192_v40 }
 0x47f   :  { %3006 = vmatpush3.bf16.msra.mxu1 %v3096_v54 }
 0x480   :  { %3007 = vmatprep.subr.bf16.mxu1 %v3192_v40 }
 0x483   :  { %3008 = vmatpush3.bf16.msra.mxu1 %v3097_v58 }
 0x484   :  { %3009 = vmatprep.subr.bf16.mxu1 %v3192_v40 }
 0x487   :  { %3010 = vmatpush3.bf16.msra.mxu1 %v3098_v23 }
 0x488   :  { %3011 = vmatprep.subr.bf16.mxu1 %v3192_v40 }
 0x48b   :  { %3012 = vmatpush3.bf16.msra.mxu1 %v3099_v35 }
 0x48c   :  { %3013 = vmatprep.subr.bf16.mxu1 %v3192_v40 }
 0x48f   :  { %3014 = vmatpush3.bf16.msra.mxu1 %v3100_v36 }
 0x490   :  { %3015 = vmatprep.subr.bf16.mxu1 %v3192_v40 }
 0x493   :  { %3016 = vmatpush3.bf16.msra.mxu1 %v3101_v37 }
 0x531   :  { %v1253_v38 = vpop.f32.mrb[32].mxu1 }
 0x532   :  { %v2957_v39 = vpop.f32.mrb[33].mxu1  ;;  %v1581_v41 = vpack.c.bf16 %v1253_v38, %v1253_v38 }
 0x533   :  { %v1299_v50 = vpop.f32.mrb[28].mxu0  ;;  %v1256_v16 = vpop.f32.mrb[34].mxu1 }
 0x534   :  { %v1582_v56 = vpack.c.bf16 %v1299_v50, %v1299_v50  ;;  %v2963_v43 = vpop.f32.mrb[29].mxu0  ;;  %v2958_v44 = vpop.f32.mrb[35].mxu1  ;;  %v1620_v51 = vunpack.c.l.b16 %v1581_v41 }
 0x535   :  { %v1302_v48 = vpop.f32.mrb[30].mxu0 }
 0x536   :  { %v1621_v45 = vunpack.c.l.b16 %v1582_v56  ;;  %v2964_v49 = vpop.f32.mrb[31].mxu0 }
 0x537   :  { %v2699_v49 = vld [vmem:[%s4043_s8] ss:$0 sm:$0xff] }
 0x538   :  { %v1628_v53 = vrot.slane %v1621_v45, 7 }
 0x539   :  { %v1345_v57 = vpop.f32.mrb[36].mxu1 }
 0x53a   :  { %v1629_v55 = vsel %vm556_vm13, %v1628_v53, %v1620_v51  ;;  %v1583_v59 = vpack.c.bf16 %v1345_v57, %v1345_v57  ;;  %v2969_v60 = vpop.f32.mrb[37].mxu1 }
 0x53b   :  { %v1348_v62 = vpop.f32.mrb[38].mxu1 }
 0x53c   :  { %v1622_v0 = vunpack.c.l.b16 %v1583_v59  ;;  %v2970_v4 = vpop.f32.mrb[39].mxu1 }
 0x53d   :  { %v1391_v9 = vpop.f32.mrb[32].mxu0 }
 0x53e   :  { %v1630_v10 = vrot.slane %v1622_v0, 6  ;;  %v1584_v12 = vpack.c.bf16 %v1391_v9, %v1391_v9  ;;  %v2975_v15 = vpop.f32.mrb[33].mxu0 }
 0x53f   :  { %v1394_v18 = vpop.f32.mrb[34].mxu0 }
 0x540   :  { %v1631_v19 = vsel %vm559_vm14, %v1630_v10, %v1629_v55  ;;  %v1623_v21 = vunpack.c.l.b16 %v1584_v12  ;;  %v2976_v11 = vpop.f32.mrb[35].mxu0 }
 0x541   :  { %v1437_v22 = vpop.f32.mrb[40].mxu1 }
 0x542   :  { %v1632_v25 = vrot.slane %v1623_v21, 5  ;;  %v1585_v26 = vpack.c.bf16 %v1437_v22, %v1437_v22  ;;  %v2981_v14 = vpop.f32.mrb[41].mxu1 }
 0x543   :  { %v1440_v27 = vpop.f32.mrb[42].mxu1 }
 0x544   :  { %v1633_v29 = vsel %vm562_vm15, %v1632_v25, %v1631_v19  ;;  %v1624_v30 = vunpack.c.l.b16 %v1585_v26  ;;  %v2982_v47 = vpop.f32.mrb[43].mxu1 }
 0x545   :  { %v1483_v2 = vpop.f32.mrb[36].mxu0 }
 0x546   :  { %v1634_v31 = vrot.slane %v1624_v30, 4  ;;  %v1586_v46 = vpack.c.bf16 %v1483_v2, %v1483_v2  ;;  %v2987_v52 = vpop.f32.mrb[37].mxu0 }
 0x547   :  { %v1486_v32 = vpop.f32.mrb[38].mxu0 }
 0x548   :  { %v1635_v42 = vsel %vm565_vm0, %v1634_v31, %v1633_v29  ;;  %v1625_v33 = vunpack.c.l.b16 %v1586_v46  ;;  %v2988_v61 = vpop.f32.mrb[39].mxu0 }
 0x549   :  { %v1529_v34 = vpop.f32.mrb[44].mxu1 }
 0x54a   :  { %v1636_v5 = vrot.slane %v1625_v33, 3  ;;  %v1587_v13 = vpack.c.bf16 %v1529_v34, %v1529_v34  ;;  %v2993_v54 = vpop.f32.mrb[45].mxu1 }
 0x54b   :  { %v1532_v58 = vpop.f32.mrb[46].mxu1 }
 0x54c   :  { %v1637_v23 = vsel %vm568_vm1, %v1636_v5, %v1635_v42  ;;  %v1626_v35 = vunpack.c.l.b16 %v1587_v13  ;;  %v2994_v36 = vpop.f32.mrb[47].mxu1 }
 0x54d   :  { %v1575_v37 = vpop.f32.mrb[40].mxu0 }
 0x54e   :  { %v1638_v38 = vrot.slane %v1626_v35, 2  ;;  %v1588_v39 = vpack.c.bf16 %v1575_v37, %v1575_v37  ;;  %v2999_v50 = vpop.f32.mrb[41].mxu0 }
 0x54f   :  { %v1578_v41 = vpop.f32.mrb[42].mxu0 }
 0x550   :  { %v1639_v16 = vsel %vm571_vm2, %v1638_v38, %v1637_v23  ;;  %v1627_v56 = vunpack.c.l.b16 %v1588_v39  ;;  %v3000_v43 = vpop.f32.mrb[43].mxu0 }
 0x552   :  { %v1640_v44 = vrot.slane %v1627_v56, 1 }
 0x554   :  { %v1641_v48 = vsel %vm574_vm3, %v1640_v44, %v1639_v16 }
 0x555   :  { %v1642_v45 = vpack.c.b16 %v1641_v48, %v1641_v48 }
 0x557   :  { %3018 = vmatmul.mubr.bf16.vlgmr.msra.gmra.mrb[48].mxu1 %v1642_v45 }
 0x62a   :  { %v1726_v51 = vpop.f32.mrb[48].mxu1 }
 0x62b   :  { %v1727_v53 = vadd.f32 %v2699_v49, %v1726_v51  ;;  %v3019_v55 = vpop.f32.mrb[49].mxu1 }
 0x62c   :  { %v1729_v57 = vpop.f32.mrb[50].mxu1 }
 0x62d   :  { %v3020_v59 = vpop.f32.mrb[51].mxu1  ;;  %v1733_v60 = vrot.slane %v1727_v53, 1  ;;  %v1734_v62 = vrot.slane %v1727_v53, 2  ;;  %v1735_v0 = vrot.slane %v1727_v53, 3  ;;  %v1736_v4 = vrot.slane %v1727_v53, 4 }
 0x62e   :  { %v1737_v9 = vrot.slane %v1727_v53, 5  ;;  %v1738_v10 = vrot.slane %v1727_v53, 6  ;;  %v1739_v12 = vrot.slane %v1727_v53, 7  ;;  %v1748_v15 = vadd.f32 %v1727_v53, %v3443_v1 }
 0x62f   :  { %v1749_v18 = vadd.f32 %v1733_v60, %v3451_v7  ;;  %v1750_v19 = vadd.f32 %v3439_v63, %v1734_v62  ;;  %v1751_v21 = vadd.f32 %v3445_v3, %v1735_v0  ;;  %v1752_v11 = vadd.f32 %v1736_v4, %v3464_v20 }
 0x630   :  { %v1753_v22 = vadd.f32 %v1737_v9, %v3476_v28  ;;  %v1754_v25 = vadd.f32 %v3460_v17, %v1738_v10  ;;  %v1755_v26 = vadd.f32 %v3469_v24, %v1739_v12 }
 0x631   :  { %v1766_v14 = vrot.slane %v1749_v18, 7  ;;  %v1768_v27 = vrot.slane %v1750_v19, 6  ;;  %v1770_v30 = vrot.slane %v1751_v21, 5  ;;  %v1772_v7 = vrot.slane %v1752_v11, 4 }
 0x632   :  { %v1774_v47 = vrot.slane %v1753_v22, 3  ;;  %v1776_v20 = vrot.slane %v1754_v25, 2  ;;  %v1778_v2 = vrot.slane %v1755_v26, 1 }
 0x633   :  { %v1767_v29 = vsel %vm556_vm13, %v1766_v14, %v1748_v15  ;;  %v3116_v14 = vld [vmem:[%s4044_s11 + $0x44] ss:$8 sps:$4 sm:$0xff]  }
 0x634   :  { %v1769_v1 = vsel %vm559_vm14, %v1768_v27, %v1767_v29  ;;  %v3114_v27 = vld [vmem:[%s4044_s11 + $0x40] ss:$8 sps:$4 sm:$0xff]   ;;  %v3119_v29 = vld [vmem:[%s4044_s11 + $0x54] ss:$8 sps:$4 sm:$0xff]  }
 0x635   :  { %v1771_v63 = vsel %vm562_vm15, %v1770_v30, %v1769_v1  ;;  %v3117_v30 = vld [vmem:[%s4044_s11 + $0x50] ss:$8 sps:$4 sm:$0xff]   ;;  %v3122_v1 = vld [vmem:[%s4044_s11 + $0x64] ss:$8 sps:$4 sm:$0xff]  }
 0x636   :  { %v1773_v3 = vsel %vm565_vm0, %v1772_v7, %v1771_v63  ;;  %v3120_v7 = vld [vmem:[%s4044_s11 + $0x60] ss:$8 sps:$4 sm:$0xff]   ;;  %v3125_v63 = vld [vmem:[%s4044_s11 + $0x74] ss:$8 sps:$4 sm:$0xff]  }
 0x637   :  { %v1775_v28 = vsel %vm568_vm1, %v1774_v47, %v1773_v3  ;;  %v3123_v47 = vld [vmem:[%s4044_s11 + $0x70] ss:$8 sps:$4 sm:$0xff]  }
 0x638   :  { %v1777_v17 = vsel %vm571_vm2, %v1776_v20, %v1775_v28 }
 0x639   :  { %v1779_v24 = vsel %vm574_vm3, %v1778_v2, %v1777_v17  ;;  %v2708_v17 = vld [vmem:[%s4045_s9] ss:$0 sm:$0xff] }
 0x63a   :  { %1781 = vadd.xlane.f32.xlu1 %v1779_v24 }
 0x6c7   :  { %v1782_v31 = vpop.xlane.xlu1 %1781 }
 0x6c8   :  { %v1784_v46 = vmul.f32 0.0078125, %v1782_v31 }
 0x6ca   :  { %v1786_v52 = vrot.slane %v1784_v46, 1  ;;  %v1787_v32 = vrot.slane %v1784_v46, 2  ;;  %v1788_v42 = vrot.slane %v1784_v46, 3  ;;  %v1789_v33 = vrot.slane %v1784_v46, 4 }
 0x6cb   :  { %v1790_v61 = vrot.slane %v1784_v46, 5  ;;  %v1791_v34 = vrot.slane %v1784_v46, 6  ;;  %v1792_v5 = vrot.slane %v1784_v46, 7  ;;  %v3713_v13 = vsub.f32 %v1748_v15, %v1784_v46  ;;  %v3102_v15 = vld [vmem:[%s4044_s11] ss:$8 sps:$4 sm:$0xff]  }
 0x6cc   :  { %v3715_v54 = vsub.f32 %v1749_v18, %v1786_v52  ;;  %v3717_v58 = vsub.f32 %v1750_v19, %v1787_v32  ;;  %v3719_v23 = vsub.f32 %v1751_v21, %v1788_v42  ;;  %v3721_v35 = vsub.f32 %v1752_v11, %v1789_v33  ;;  %v3104_v18 = vld [vmem:[%s4044_s11 + $0x4] ss:$8 sps:$4 sm:$0xff]   ;;  %v3107_v19 = vld [vmem:[%s4044_s11 + $0x14] ss:$8 sps:$4 sm:$0xff]   ;;  %v3105_v21 = vld [vmem:[%s4044_s11 + $0x10] ss:$8 sps:$4 sm:$0xff]  }
 0x6cd   :  { %v3723_v36 = vsub.f32 %v1753_v22, %v1790_v61  ;;  %v3725_v37 = vsub.f32 %v1754_v25, %v1791_v34  ;;  %v3727_v38 = vsub.f32 %v1755_v26, %v1792_v5  ;;  %v1809_v56 = vmul.f32 %v3713_v13, %v3713_v13  ;;  %2045 = vmatprep.subr.bf16.mxu0 %v3104_v18  ;;  %v3110_v11 = vld [vmem:[%s4044_s11 + $0x24] ss:$8 sps:$4 sm:$0xff]   ;;  %v3108_v22 = vld [vmem:[%s4044_s11 + $0x20] ss:$8 sps:$4 sm:$0xff]   ;;  %v3113_v25 = vld [vmem:[%s4044_s11 + $0x34] ss:$8 sps:$4 sm:$0xff]  }
 0x6ce   :  { %v1810_v39 = vmul.f32 %v3715_v54, %v3715_v54  ;;  %v1811_v50 = vmul.f32 %v3717_v58, %v3717_v58  ;;  %v1812_v41 = vmul.f32 %v3719_v23, %v3719_v23  ;;  %v1813_v16 = vmul.f32 %v3721_v35, %v3721_v35  ;;  %2046 = vmatpush1.bf16.msra.mxu0 %v3102_v15  ;;  %v3111_v26 = vld [vmem:[%s4044_s11 + $0x30] ss:$8 sps:$4 sm:$0xff]   ;;  %v2709_v34 = vld [vmem:[%s4046_s10] ss:$0 sm:$0xff] }
 0x6cf   :  { %v1814_v43 = vmul.f32 %v3723_v36, %v3723_v36  ;;  %v1815_v45 = vmul.f32 %v3725_v37, %v3725_v37  ;;  %v1816_v49 = vmul.f32 %v3727_v38, %v3727_v38  ;;  %2047 = vmatprep.subr.bf16.mxu0 %v3107_v19 }
 0x6d0   :  { %v1825_v44 = vrot.slane %v1810_v39, 7  ;;  %v1827_v48 = vrot.slane %v1811_v50, 6  ;;  %v1829_v53 = vrot.slane %v1812_v41, 5  ;;  %v1831_v57 = vrot.slane %v1813_v16, 4 }
 0x6d1   :  { %v1833_v60 = vrot.slane %v1814_v43, 3  ;;  %v1835_v0 = vrot.slane %v1815_v45, 2  ;;  %v1837_v9 = vrot.slane %v1816_v49, 1 }
 0x6d2   :  { %v1826_v51 = vsel %vm556_vm13, %v1825_v44, %v1809_v56  ;;  %2048 = vmatpush1.bf16.msra.mxu0 %v3105_v21 }
 0x6d3   :  { %v1828_v55 = vsel %vm559_vm14, %v1827_v48, %v1826_v51  ;;  %2049 = vmatprep.subr.bf16.mxu0 %v3110_v11 }
 0x6d4   :  { %v1830_v59 = vsel %vm562_vm15, %v1829_v53, %v1828_v55 }
 0x6d5   :  { %v1832_v62 = vsel %vm565_vm0, %v1831_v57, %v1830_v59 }
 0x6d6   :  { %v1834_v4 = vsel %vm568_vm1, %v1833_v60, %v1832_v62  ;;  %2050 = vmatpush1.bf16.msra.mxu0 %v3108_v22 }
 0x6d7   :  { %v1836_v10 = vsel %vm571_vm2, %v1835_v0, %v1834_v4  ;;  %2051 = vmatprep.subr.bf16.mxu0 %v3113_v25 }
 0x6d8   :  { %v1838_v12 = vsel %vm574_vm3, %v1837_v9, %v1836_v10 }
 0x6d9   :  { %1840 = vadd.xlane.f32.xlu0 %v1838_v12 }
 0x6da   :  { %2052 = vmatpush1.bf16.msra.mxu0 %v3111_v26 }
 0x6db   :  { %2053 = vmatprep.subr.bf16.mxu0 %v3116_v14 }
 0x6de   :  { %2054 = vmatpush1.bf16.msra.mxu0 %v3114_v27 }
 0x6df   :  { %2055 = vmatprep.subr.bf16.mxu0 %v3119_v29 }
 0x6e2   :  { %2056 = vmatpush1.bf16.msra.mxu0 %v3117_v30 }
 0x6e3   :  { %2057 = vmatprep.subr.bf16.mxu0 %v3122_v1 }
 0x6e6   :  { %2058 = vmatpush1.bf16.msra.mxu0 %v3120_v7 }
 0x6e7   :  { %2059 = vmatprep.subr.bf16.mxu0 %v3125_v63 }
 0x6ea   :  { %2060 = vmatpush1.bf16.msra.mxu0 %v3123_v47 }
 0x6eb   :  { %3021 = vmatprep.subr.bf16.mxu0 %v3192_v40 }
 0x766   :  { %v1841_v3 = vpop.xlane.xlu0 %1840 }
 0x767   :  { %v1842_v20 = vmul.f32 0.0078125, %v1841_v3 }
 0x769   :  { %v1843_v28 = vadd.f32 1e-05, %v1842_v20 }
 0x76b   :  { %3182 = vrsqrt.f32 %v1843_v28 }
 0x775   :  { %v3183_v2 = vpop.eup %3182 }
 0x776   :  { %v1846_v24 = vrot.slane %v3183_v2, 1  ;;  %v1847_v31 = vrot.slane %v3183_v2, 2  ;;  %v1848_v46 = vrot.slane %v3183_v2, 3  ;;  %v1849_v52 = vrot.slane %v3183_v2, 4 }
 0x777   :  { %v1850_v32 = vrot.slane %v3183_v2, 5  ;;  %v1851_v42 = vrot.slane %v3183_v2, 6  ;;  %v1852_v33 = vrot.slane %v3183_v2, 7  ;;  %v1861_v61 = vmul.f32 %v3183_v2, %v3713_v13 }
 0x778   :  { %v1862_v5 = vmul.f32 %v1846_v24, %v3715_v54  ;;  %v1863_v39 = vmul.f32 %v1847_v31, %v3717_v58  ;;  %v1864_v50 = vmul.f32 %v1848_v46, %v3719_v23  ;;  %v1865_v41 = vmul.f32 %v1849_v52, %v3721_v35  ;;  %v3126_v46 = vld [vmem:[%s4047_s13 + $0x40] sm:$0xff]  }
 0x779   :  { %v1866_v16 = vmul.f32 %v1850_v32, %v3723_v36  ;;  %v1867_v56 = vmul.f32 %v1851_v42, %v3725_v37  ;;  %v1868_v43 = vmul.f32 %v1852_v33, %v3727_v38  ;;  %v1875_v44 = vmul.f32 %v2708_v17, %v1861_v61  ;;  %v3127_v52 = vld [vmem:[%s4047_s13] sm:$0xff]   ;;  %2828 = vmatprep.subr.bf16.mxu1 %v3126_v46  ;;  %v3128_v32 = vld [vmem:[%s4047_s13 + $0x48] sm:$0xff]   ;;  %v3130_v33 = vld [vmem:[%s4047_s13 + $0x50] sm:$0xff]  }
 0x77a   :  { %v1876_v13 = vmul.f32 %v2708_v17, %v1862_v5  ;;  %v1877_v48 = vmul.f32 %v2708_v17, %v1863_v39  ;;  %v1878_v45 = vmul.f32 %v2708_v17, %v1864_v50  ;;  %v1879_v49 = vmul.f32 %v2708_v17, %v1865_v41  ;;  %2829 = vmatpush3.bf16.msra.mxu1 %v3127_v52  ;;  %v3129_v42 = vld [vmem:[%s4047_s13 + $0x8] sm:$0xff]   ;;  %v3131_v61 = vld [vmem:[%s4047_s13 + $0x10] sm:$0xff]   ;;  %v3133_v5 = vld [vmem:[%s4047_s13 + $0x18] sm:$0xff]  }
 0x77b   :  { %v1880_v51 = vmul.f32 %v2708_v17, %v1866_v16  ;;  %v1881_v53 = vmul.f32 %v2708_v17, %v1867_v56  ;;  %v1882_v54 = vmul.f32 %v2708_v17, %v1868_v43  ;;  %v3815_v55 = vadd.f32 %v2709_v34, %v1875_v44  ;;  %2830 = vmatprep.subr.bf16.mxu1 %v3128_v32  ;;  %v3134_v39 = vld [vmem:[%s4047_s13 + $0x60] sm:$0xff]   ;;  %v3136_v41 = vld [vmem:[%s4047_s13 + $0x68] sm:$0xff]   ;;  %v3138_v56 = vld [vmem:[%s4047_s13 + $0x70] sm:$0xff]  }
 0x77c   :  { %v3817_v58 = vadd.f32 %v2709_v34, %v1876_v13  ;;  %v3819_v23 = vadd.f32 %v2709_v34, %v1877_v48  ;;  %v3821_v35 = vadd.f32 %v2709_v34, %v1878_v45  ;;  %v3823_v36 = vadd.f32 %v2709_v34, %v1879_v49  ;;  %v3135_v50 = vld [vmem:[%s4047_s13 + $0x20] sm:$0xff]   ;;  %v3137_v16 = vld [vmem:[%s4047_s13 + $0x28] sm:$0xff]   ;;  %v3139_v43 = vld [vmem:[%s4047_s13 + $0x30] sm:$0xff]  }
 0x77d   :  { %v3825_v37 = vadd.f32 %v2709_v34, %v1880_v51  ;;  %v3827_v38 = vadd.f32 %v2709_v34, %v1881_v53  ;;  %v3829_v57 = vadd.f32 %v2709_v34, %v1882_v54  ;;  %v1897_v59 = vpack.c.bf16 %v3815_v55, %v3815_v55  ;;  %v3132_v34 = vld [vmem:[%s4047_s13 + $0x58] sm:$0xff]   ;;  %v1921_v48 = vld [vmem:[%s4048_s12] sm:$0x3] }
 0x77e   :  { %v1898_v60 = vpack.c.bf16 %v3817_v58, %v3817_v58  ;;  %v1899_v62 = vpack.c.bf16 %v3819_v23, %v3819_v23  ;;  %v1900_v0 = vpack.c.bf16 %v3821_v35, %v3821_v35  ;;  %v1901_v4 = vpack.c.bf16 %v3823_v36, %v3823_v36  ;;  %2831 = vmatpush3.bf16.msra.mxu1 %v3129_v42  ;;  %v3140_v44 = vld [vmem:[%s4047_s13 + $0x78] sm:$0xff]  }
 0x77f   :  { %v1902_v9 = vpack.c.bf16 %v3825_v37, %v3825_v37  ;;  %v1903_v10 = vpack.c.bf16 %v3827_v38, %v3827_v38  ;;  %v1904_v12 = vpack.c.bf16 %v3829_v57, %v3829_v57  ;;  %v1941_v11 = vunpack.c.l.b16 %v1897_v59  ;;  %2832 = vmatprep.subr.bf16.mxu1 %v3130_v33  ;;  %v3141_v13 = vld [vmem:[%s4047_s13 + $0x38] sm:$0xff]  }
 0x780   :  { %v1942_v15 = vunpack.c.l.b16 %v1898_v60  ;;  %v1943_v18 = vunpack.c.l.b16 %v1899_v62  ;;  %v1944_v19 = vunpack.c.l.b16 %v1900_v0  ;;  %v1945_v21 = vunpack.c.l.b16 %v1901_v4 }
 0x781   :  { %v1946_v22 = vunpack.c.l.b16 %v1902_v9  ;;  %v1947_v14 = vunpack.c.l.b16 %v1903_v10  ;;  %v1948_v27 = vunpack.c.l.b16 %v1904_v12  ;;  %v1926_v45 = vrot.slane %v1921_v48, %v3321_v6 }
 0x782   :  { %v1949_v25 = vrot.slane %v1942_v15, 7  ;;  %v1951_v26 = vrot.slane %v1943_v18, 6  ;;  %v1953_v30 = vrot.slane %v1944_v19, 5  ;;  %v1955_v7 = vrot.slane %v1945_v21, 4  ;;  %2833 = vmatpush3.bf16.msra.mxu1 %v3131_v61 }
 0x783   :  { %v1957_v47 = vrot.slane %v1946_v22, 3  ;;  %v1959_v20 = vrot.slane %v1947_v14, 2  ;;  %v1961_v2 = vrot.slane %v1948_v27, 1  ;;  %2834 = vmatprep.subr.bf16.mxu1 %v3132_v34  ;;  %v1930_v49 = vrot.slane %v1921_v48, %v3325_v8 }
 0x784   :  { %v1950_v29 = vsel %vm556_vm13, %v1949_v25, %v1941_v11 }
 0x785   :  { %v1952_v1 = vsel %vm559_vm14, %v1951_v26, %v1950_v29 }
 0x786   :  { %v1954_v63 = vsel %vm562_vm15, %v1953_v30, %v1952_v1  ;;  %2835 = vmatpush3.bf16.msra.mxu1 %v3133_v5 }
 0x787   :  { %v1956_v3 = vsel %vm565_vm0, %v1955_v7, %v1954_v63  ;;  %2836 = vmatprep.subr.bf16.mxu1 %v3134_v39 }
 0x788   :  { %v1958_v28 = vsel %vm568_vm1, %v1957_v47, %v1956_v3  ;;  %v2726_v47 = vld [vmem:[%s4049_s14] ss:$0 sm:$0xff] }
 0x789   :  { %v1960_v17 = vsel %vm571_vm2, %v1959_v20, %v1958_v28 }
 0x78a   :  { %v1962_v24 = vsel %vm574_vm3, %v1961_v2, %v1960_v17  ;;  %2837 = vmatpush3.bf16.msra.mxu1 %v3135_v50 }
 0x78b   :  { %v1963_v31 = vpack.c.b16 %v1962_v24, %v1962_v24  ;;  %2838 = vmatprep.subr.bf16.mxu1 %v3136_v41 }
 0x78d   :  { %2078 = vmatmul.mubr.bf16.vlgmr.msra.gmra.mrb[44].mxu0 %v1963_v31 }
 0x78e   :  { %3037 = vmatprep.mubr.msk.bf16.mxu0 %vm3195_vm12, %v3192_v40  ;;  %2839 = vmatpush3.bf16.msra.mxu1 %v3137_v16 }
 0x78f   :  { %2840 = vmatprep.subr.bf16.mxu1 %v3138_v56 }
 0x792   :  { %2841 = vmatpush3.bf16.msra.mxu1 %v3139_v43 }
 0x793   :  { %2842 = vmatprep.subr.bf16.mxu1 %v3140_v44 }
 0x796   :  { %2843 = vmatpush3.bf16.msra.mxu1 %v3141_v13 }
 0x797   :  { %3041 = vmatprep.subr.bf16.mxu1 %v3192_v40 }
 0x860   :  { %v2079_v51 = vpop.f32.mrb[44].mxu0 }
 0x861   :  { %v2080_v53 = vadd.f32 %v2079_v51, %v1926_v45  ;;  %v2081_v54 = vpop.f32.mrb[45].mxu0 }
 0x862   :  { %v2082_v59 = vadd.f32 %v2081_v54, %v1930_v49  ;;  %v2083_v60 = vpop.f32.mrb[46].mxu0 }
 0x863   :  { %v2086_v62 = vmul.f32 %v2080_v53, %v2080_v53  ;;  %v2084_v0 = vpop.f32.mrb[47].mxu0 }
 0x864   :  { %v2087_v4 = vmul.f32 %v2082_v59, %v2082_v59 }
 0x865   :  { %v2088_v9 = vmul.f32 %v2086_v62, %v2080_v53 }
 0x866   :  { %v2089_v10 = vmul.f32 %v2087_v4, %v2082_v59 }
 0x867   :  { %v2090_v12 = vmul.f32 0.044715, %v2088_v9 }
 0x868   :  { %v2091_v15 = vmul.f32 0.044715, %v2089_v10 }
 0x869   :  { %v2092_v18 = vadd.f32 %v2090_v12, %v2080_v53 }
 0x86a   :  { %v2093_v19 = vadd.f32 %v2091_v15, %v2082_v59 }
 0x86b   :  { %v2094_v21 = vmul.f32 0.7978846, %v2092_v18 }
 0x86c   :  { %v2095_v11 = vmul.f32 0.7978846, %v2093_v19 }
 0x86d   :  { %3184 = vtanh.f32 %v2094_v21 }
 0x86e   :  { %3186 = vtanh.f32 %v2095_v11 }
 0x877   :  { %v3185_v22 = vpop.eup %3184 }
 0x878   :  { %v3187_v8 = vpop.eup %3186  ;;  %v2098_v25 = vadd.f32 1.0, %v3185_v22 }
 0x879   :  { %v2099_v26 = vadd.f32 1.0, %v3187_v8 }
 0x87a   :  { %v2100_v14 = vmul.f32 0.5, %v2098_v25 }
 0x87b   :  { %v2101_v27 = vmul.f32 0.5, %v2099_v26 }
 0x87c   :  { %v2102_v29 = vmul.f32 %v2100_v14, %v2080_v53 }
 0x87d   :  { %v2103_v30 = vmul.f32 %v2101_v27, %v2082_v59 }
 0x87e   :  { %v2104_v7 = vpack.c.bf16 %v2102_v29, %v2102_v29 }
 0x87f   :  { %v2105_v1 = vpack.c.bf16 %v2103_v30, %v2103_v30 }
 0x881   :  { %2273 = vmatprep.mubr.bf16.mxu1 %v2105_v1 }
 0x882   :  { %2274 = vmatmul.mubr.bf16.vlgmr.msra.gmra.mrb[52].mxu1 %v2104_v7 }
 0x883   :  { %3043 = vmatprep.mubr.msk.bf16.mxu1 %vm3195_vm12, %v3192_v40 }
 0x955   :  { %v2844_v63 = vpop.f32.mrb[52].mxu1 }
 0x956   :  { %v2845_v3 = vpop.f32.mrb[53].mxu1 }
 0x957   :  { %v2846_v20 = vadd.f32 %v2845_v3, %v2844_v63  ;;  %v2847_v28 = vpop.f32.mrb[54].mxu1 }
 0x958   :  { %v2848_v2 = vpop.f32.mrb[55].mxu1 }
 0x959   :  { %v2276_v17 = vadd.f32 %v2846_v20, %v2726_v47 }
 0x95b   :  { %v2282_v24 = vrot.slane %v2276_v17, 1  ;;  %v2283_v31 = vrot.slane %v2276_v17, 2  ;;  %v2284_v46 = vrot.slane %v2276_v17, 3  ;;  %v2285_v52 = vrot.slane %v2276_v17, 4 }
 0x95c   :  { %v2286_v32 = vrot.slane %v2276_v17, 5  ;;  %v2287_v42 = vrot.slane %v2276_v17, 6  ;;  %v2288_v33 = vrot.slane %v2276_v17, 7  ;;  %v2297_v50 = vadd.f32 %v2276_v17, %v3815_v55 }
 0x95d   :  { %v2298_v61 = vadd.f32 %v2282_v24, %v3817_v58  ;;  %v2299_v34 = vadd.f32 %v2283_v31, %v3819_v23  ;;  %v2300_v5 = vadd.f32 %v2284_v46, %v3821_v35  ;;  %v2301_v39 = vadd.f32 %v2285_v52, %v3823_v36 }
 0x95e   :  { %v2302_v41 = vadd.f32 %v2286_v32, %v3825_v37  ;;  %v2303_v43 = vadd.f32 %v2287_v42, %v3827_v38  ;;  %v2304_v44 = vadd.f32 %v2288_v33, %v3829_v57  ;;  %v3142_v33 = vld [vmem:[%s4050_s17] sm:$0xff]  }
 0x95f   :  { %v2315_v16 = vrot.slane %v2298_v61, 7  ;;  %v2317_v56 = vrot.slane %v2299_v34, 6  ;;  %v2319_v48 = vrot.slane %v2300_v5, 5  ;;  %v2321_v23 = vrot.slane %v2301_v39, 4  ;;  %3022 = vmatpush3.bf16.msra.mxu0 %v3142_v33 }
 0x960   :  { %v2323_v45 = vrot.slane %v2302_v41, 3  ;;  %v2325_v55 = vrot.slane %v2303_v43, 2  ;;  %v2327_v49 = vrot.slane %v2304_v44, 1  ;;  %3023 = vmatprep.subr.bf16.mxu0 %v3192_v40 }
 0x961   :  { %v2316_v13 = vsel %vm556_vm13, %v2315_v16, %v2297_v50  ;;  %v3149_v16 = vld [vmem:[%s4050_s17 + $0x38] sm:$0xff]  }
 0x962   :  { %v2318_v58 = vsel %vm559_vm14, %v2317_v56, %v2316_v13 }
 0x963   :  { %v2320_v35 = vsel %vm562_vm15, %v2319_v48, %v2318_v58  ;;  %v2743_v48 = vld [vmem:[%s4051_s15] ss:$0 sm:$0xff] }
 0x964   :  { %v2322_v36 = vsel %vm565_vm0, %v2321_v23, %v2320_v35 }
 0x965   :  { %v2324_v37 = vsel %vm568_vm1, %v2323_v45, %v2322_v36 }
 0x966   :  { %v2326_v51 = vsel %vm571_vm2, %v2325_v55, %v2324_v37 }
 0x967   :  { %v2328_v38 = vsel %vm574_vm3, %v2327_v49, %v2326_v51 }
 0x968   :  { %2330 = vadd.xlane.f32.xlu1 %v2328_v38 }
 0x9f5   :  { %v2331_v57 = vpop.xlane.xlu1 %2330 }
 0x9f6   :  { %v2332_v53 = vmul.f32 0.0078125, %v2331_v57 }
 0x9f8   :  { %v2334_v54 = vrot.slane %v2332_v53, 1  ;;  %v2335_v59 = vrot.slane %v2332_v53, 2  ;;  %v2336_v60 = vrot.slane %v2332_v53, 3  ;;  %v2337_v62 = vrot.slane %v2332_v53, 4 }
 0x9f9   :  { %v2338_v0 = vrot.slane %v2332_v53, 5  ;;  %v2339_v4 = vrot.slane %v2332_v53, 6  ;;  %v2340_v9 = vrot.slane %v2332_v53, 7  ;;  %v3930_v10 = vsub.f32 %v2297_v50, %v2332_v53  ;;  %v3147_v50 = vld [vmem:[%s4050_s17 + $0x28] sm:$0xff]  }
 0x9fa   :  { %v3932_v12 = vsub.f32 %v2298_v61, %v2334_v54  ;;  %v3934_v15 = vsub.f32 %v2299_v34, %v2335_v59  ;;  %v3936_v18 = vsub.f32 %v2300_v5, %v2336_v60  ;;  %v3938_v19 = vsub.f32 %v2301_v39, %v2337_v62  ;;  %v3143_v61 = vld [vmem:[%s4050_s17 + $0x8] sm:$0xff]   ;;  %v3144_v34 = vld [vmem:[%s4050_s17 + $0x10] sm:$0xff]   ;;  %v3145_v5 = vld [vmem:[%s4050_s17 + $0x18] sm:$0xff]  }
 0x9fb   :  { %v3940_v21 = vsub.f32 %v2302_v41, %v2338_v0  ;;  %v3942_v11 = vsub.f32 %v2303_v43, %v2339_v4  ;;  %v3944_v22 = vsub.f32 %v2304_v44, %v2340_v9  ;;  %v2357_v27 = vmul.f32 %v3930_v10, %v3930_v10  ;;  %3024 = vmatpush3.bf16.msra.mxu0 %v3143_v61  ;;  %v3146_v39 = vld [vmem:[%s4050_s17 + $0x20] sm:$0xff]   ;;  %v3148_v41 = vld [vmem:[%s4050_s17 + $0x30] sm:$0xff]  }
 0x9fc   :  { %v2358_v8 = vmul.f32 %v3932_v12, %v3932_v12  ;;  %v2359_v25 = vmul.f32 %v3934_v15, %v3934_v15  ;;  %v2360_v26 = vmul.f32 %v3936_v18, %v3936_v18  ;;  %v2361_v14 = vmul.f32 %v3938_v19, %v3938_v19  ;;  %3025 = vmatprep.subr.bf16.mxu0 %v3192_v40 }
 0x9fd   :  { %v2362_v29 = vmul.f32 %v3940_v21, %v3940_v21  ;;  %v2363_v7 = vmul.f32 %v3942_v11, %v3942_v11  ;;  %v2364_v63 = vmul.f32 %v3944_v22, %v3944_v22 }
 0x9fe   :  { %v2373_v30 = vrot.slane %v2358_v8, 7  ;;  %v2375_v1 = vrot.slane %v2359_v25, 6  ;;  %v2377_v3 = vrot.slane %v2360_v26, 5  ;;  %v2379_v28 = vrot.slane %v2361_v14, 4 }
 0x9ff   :  { %v2381_v17 = vrot.slane %v2362_v29, 3  ;;  %v2383_v31 = vrot.slane %v2363_v7, 2  ;;  %v2385_v52 = vrot.slane %v2364_v63, 1  ;;  %3026 = vmatpush3.bf16.msra.mxu0 %v3144_v34 }
 0xa00   :  { %v2374_v47 = vsel %vm556_vm13, %v2373_v30, %v2357_v27  ;;  %3027 = vmatprep.subr.bf16.mxu0 %v3192_v40 }
 0xa01   :  { %v2376_v20 = vsel %vm559_vm14, %v2375_v1, %v2374_v47 }
 0xa02   :  { %v2378_v2 = vsel %vm562_vm15, %v2377_v3, %v2376_v20 }
 0xa03   :  { %v2380_v24 = vsel %vm565_vm0, %v2379_v28, %v2378_v2  ;;  %3028 = vmatpush3.bf16.msra.mxu0 %v3145_v5 }
 0xa04   :  { %v2382_v46 = vsel %vm568_vm1, %v2381_v17, %v2380_v24  ;;  %3029 = vmatprep.subr.bf16.mxu0 %v3192_v40 }
 0xa05   :  { %v2384_v32 = vsel %vm571_vm2, %v2383_v31, %v2382_v46 }
 0xa06   :  { %v2386_v42 = vsel %vm574_vm3, %v2385_v52, %v2384_v32 }
 0xa07   :  { %2388 = vadd.xlane.f32.xlu0 %v2386_v42  ;;  %3030 = vmatpush3.bf16.msra.mxu0 %v3146_v39 }
 0xa08   :  { %3031 = vmatprep.subr.bf16.mxu0 %v3192_v40 }
 0xa0b   :  { %3032 = vmatpush3.bf16.msra.mxu0 %v3147_v50 }
 0xa0c   :  { %3033 = vmatprep.subr.bf16.mxu0 %v3192_v40 }
 0xa0f   :  { %3034 = vmatpush3.bf16.msra.mxu0 %v3148_v41 }
 0xa10   :  { %3035 = vmatprep.subr.bf16.mxu0 %v3192_v40  ;;  %v2744_v40 = vld [vmem:[%s4052_s16] ss:$0 sm:$0xff] }
 0xa13   :  { %3036 = vmatpush3.bf16.msra.mxu0 %v3149_v16 }
 0xa94   :  { %v2389_v56 = vpop.xlane.xlu0 %2388 }
 0xa95   :  { %v2390_v43 = vmul.f32 0.0078125, %v2389_v56 }
 0xa97   :  { %v2391_v44 = vadd.f32 1e-05, %v2390_v43 }
 0xa99   :  { %3188 = vrsqrt.f32 %v2391_v44 }
 0xaa3   :  { %v3189_v13 = vpop.eup %3188 }
 0xaa4   :  { %v2394_v58 = vrot.slane %v3189_v13, 1  ;;  %v2395_v23 = vrot.slane %v3189_v13, 2  ;;  %v2396_v35 = vrot.slane %v3189_v13, 3  ;;  %v2397_v45 = vrot.slane %v3189_v13, 4 }
 0xaa5   :  { %v2398_v36 = vrot.slane %v3189_v13, 5  ;;  %v2399_v55 = vrot.slane %v3189_v13, 6  ;;  %v2400_v37 = vrot.slane %v3189_v13, 7  ;;  %v2409_v49 = vmul.f32 %v3189_v13, %v3930_v10 }
 0xaa6   :  { %v2410_v51 = vmul.f32 %v2394_v58, %v3932_v12  ;;  %v2411_v38 = vmul.f32 %v2395_v23, %v3934_v15  ;;  %v2412_v57 = vmul.f32 %v2396_v35, %v3936_v18  ;;  %v2413_v53 = vmul.f32 %v2397_v45, %v3938_v19  ;;  %v2745_v35 = vld [vmem:[%s4054_s18] ss:$0 sm:$0xff] }
 0xaa7   :  { %v2414_v54 = vmul.f32 %v2398_v36, %v3940_v21  ;;  %v2415_v59 = vmul.f32 %v2399_v55, %v3942_v11  ;;  %v2416_v60 = vmul.f32 %v2400_v37, %v3944_v22  ;;  %v2423_v62 = vmul.f32 %v2743_v48, %v2409_v49 }
 0xaa8   :  { %v2424_v0 = vmul.f32 %v2743_v48, %v2410_v51  ;;  %v2425_v4 = vmul.f32 %v2743_v48, %v2411_v38  ;;  %v2426_v9 = vmul.f32 %v2743_v48, %v2412_v57  ;;  %v2427_v10 = vmul.f32 %v2743_v48, %v2413_v53  ;;  %v2597_v38 = vld [vmem:[%s4055_s19] sm:$0x1] }
 0xaa9   :  { %v2428_v8 = vmul.f32 %v2743_v48, %v2414_v54  ;;  %v2429_v25 = vmul.f32 %v2743_v48, %v2415_v59  ;;  %v2430_v12 = vmul.f32 %v2743_v48, %v2416_v60  ;;  %v2437_v26 = vadd.f32 %v2744_v40, %v2423_v62 }
 0xaaa   :  { %v2438_v15 = vadd.f32 %v2744_v40, %v2424_v0  ;;  %v2439_v14 = vadd.f32 %v2744_v40, %v2425_v4  ;;  %v2440_v18 = vadd.f32 %v2744_v40, %v2426_v9  ;;  %v2441_v27 = vadd.f32 %v2744_v40, %v2427_v10 }
 0xaab   :  { %v2442_v19 = vadd.f32 %v2744_v40, %v2428_v8  ;;  %v2443_v29 = vadd.f32 %v2744_v40, %v2429_v25  ;;  %v2444_v21 = vadd.f32 %v2744_v40, %v2430_v12  ;;  %v2445_v30 = vpack.c.bf16 %v2437_v26, %v2437_v26 }
 0xaac   :  { %v2446_v11 = vpack.c.bf16 %v2438_v15, %v2438_v15  ;;  %v2447_v1 = vpack.c.bf16 %v2439_v14, %v2439_v14  ;;  %v2448_v22 = vpack.c.bf16 %v2440_v18, %v2440_v18  ;;  %v2449_v7 = vpack.c.bf16 %v2441_v27, %v2441_v27 }
 0xaad   :  { %v2450_v63 = vpack.c.bf16 %v2442_v19, %v2442_v19  ;;  %v2451_v47 = vpack.c.bf16 %v2443_v29, %v2443_v29  ;;  %v2452_v3 = vpack.c.bf16 %v2444_v21, %v2444_v21  ;;  %v2484_v24 = vunpack.c.l.b16 %v2445_v30 }
 0xaae   :  { %v2485_v20 = vunpack.c.l.b16 %v2446_v11  ;;  %v2486_v28 = vunpack.c.l.b16 %v2447_v1  ;;  %v2487_v2 = vunpack.c.l.b16 %v2448_v22  ;;  %v2488_v17 = vunpack.c.l.b16 %v2449_v7 }
 0xaaf   :  { %v2489_v31 = vunpack.c.l.b16 %v2450_v63  ;;  %v2490_v32 = vunpack.c.l.b16 %v2451_v47  ;;  %v2491_v42 = vunpack.c.l.b16 %v2452_v3  ;;  %v26_v58 = vstv %s4053_s20 }
 0xab0   :  { %v2492_v46 = vrot.slane %v2485_v20, 7  ;;  %v2494_v52 = vrot.slane %v2486_v28, 6  ;;  %v2496_v61 = vrot.slane %v2487_v2, 5  ;;  %v2498_v5 = vrot.slane %v2488_v17, 4  ;;  %27 = vst [vmem:[#allocation2] sm:$0x1] %v26_v58 }
 0xab1   :  { %v2500_v50 = vrot.slane %v2489_v31, 3  ;;  %v2502_v16 = vrot.slane %v2490_v32, 2  ;;  %v2504_v43 = vrot.slane %v2491_v42, 1 }
 0xab2   :  { %v2493_v33 = vsel %vm556_vm13, %v2492_v46, %v2484_v24 }
 0xab3   :  { %v2495_v34 = vsel %vm559_vm14, %v2494_v52, %v2493_v33 }
 0xab4   :  { %v2497_v39 = vsel %vm562_vm15, %v2496_v61, %v2495_v34 }
 0xab5   :  { %v2499_v41 = vsel %vm565_vm0, %v2498_v5, %v2497_v39 }
 0xab6   :  { %v2501_v56 = vsel %vm568_vm1, %v2500_v50, %v2499_v41 }
 0xab7   :  { %v2503_v44 = vsel %vm571_vm2, %v2502_v16, %v2501_v56  ;;  %v2599_v23 = vld [vmem:[#allocation2] sm:$0x1] }
 0xab8   :  { %v2505_v13 = vsel %vm574_vm3, %v2504_v43, %v2503_v44  ;;  %2602 = vperm.xlu1 %3052, %v2599_v23  }
 0xab9   :  { %v2506_v48 = vpack.c.b16 %v2505_v13, %v2505_v13 }
 0xabb   :  { %3038 = vmatmul.mubr.bf16.vlgmr.msra.gmra.mrb[48].mxu0 %v2506_v48 }
 0xb37   :  { %v2603_v57 = vpop.permute.xlu1 %2602 }
 0xb38   :  { %v2608_v53 = vrot.slane %v2603_v57, %v3321_v6 }
 0xb8e   :  { %v2590_v45 = vpop.f32.mrb[48].mxu0 }
 0xb8f   :  { %v2591_v36 = vadd.f32 %v2745_v35, %v2590_v45  ;;  %v3039_v55 = vpop.f32.mrb[49].mxu0 }
 0xb90   :  { %v2593_v37 = vpop.f32.mrb[50].mxu0 }
 0xb91   :  { %3190 = vtanh.f32 %v2591_v36  ;;  %v3040_v49 = vpop.f32.mrb[51].mxu0 }
 0xb9b   :  { %v3191_v40 = vpop.eup %3190 }
 0xb9c   :  { %v2598_v51 = vpack.c.bf16 %v3191_v40, %v3191_v40 }
 0xb9e   :  { %3042 = vmatpush3.bf16.xpose.msra.mxu1 %v2598_v51 }
 0xba5   :  { %3044 = vmatmul.mubr.bf16.vlgmr.msra.gmra.mrb[56].mxu1 %v2597_v38 }
 0xc78   :  { %v2643_v54 = vpop.f32.mrb[56].mxu1 }
 0xc79   :  { %v3045_v59 = vpop.f32.mrb[57].mxu1  ;;  %v2644_v60 = vadd.f32 %v2643_v54, %v2608_v53 }
 0xc7a   :  { %v2646_v62 = vpop.f32.mrb[58].mxu1 }
 0xc7b   :  { %2649 = vst.msk [vmem:[%s4056_s21] sm:$0x1] %vm1114_vm5, %v2644_v60  ;;  %v3046_v0 = vpop.f32.mrb[59].mxu1 }

</bundles_post_ra>
